<compile_context>
chip_gen: v6e
topology: v6e:2x2x1
jax: 0.10.0
libtpu: 0.0.40
codegen_flags: <defaults>
</compile_context>

<pallas_src>
import functools
import math

import jax
import jax.numpy as jnp
from jax import lax
from jax.experimental import pallas as pl
from jax.experimental.pallas import tpu as pltpu


# ----------------------------------------------------------------------------
# Fused kernel: one grid step = one centre element.
#   G2 fingerprints for that element's centre atoms (all images at once),
#   MLP with BatchNorm over all M = B * n_e rows, per-image energy sums.
# ----------------------------------------------------------------------------
def _bpnnp_fused_kernel(coords_ref, ctr_ref, elems_ref,
                        eta_ref, rs_ref, jelem_ref,
                        w_in_ref, b_in_ref, g_in_ref, be_in_ref,
                        w_h_ref, b_h_ref, g_h_ref, be_h_ref,
                        w_out_ref, b_out_ref,
                        out_ref, *, cutoff, rc, n_hidden, bn_eps):
    coords = coords_ref[...]            # (B, Na, 8)  coords padded to 8 on xyz
    ctr = ctr_ref[0]                    # (B, Ne, 8)  centre atoms, this element
    elems = elems_ref[...]              # (B, Na) int32
    eta = eta_ref[0]                    # (1, F)
    rs = rs_ref[0]                      # (1, F)
    jelem = jelem_ref[0]                # (1, F) int32

    B, Ne, _ = ctr.shape
    M = B * Ne

    # ---- pairwise distances centre->all, per image, via norm trick (MXU) ----
    g = jnp.einsum('bnd,bmd->bnm', ctr, coords,
                   preferred_element_type=jnp.float32)          # (B, Ne, Na)
    r2c = jnp.sum(ctr * ctr, axis=-1)                           # (B, Ne)
    r2a = jnp.sum(coords * coords, axis=-1)                     # (B, Na)
    d2 = r2c[:, :, None] + r2a[:, None, :] - 2.0 * g            # (B, Ne, Na)
    d2 = jnp.maximum(d2, 0.0)
    valid = (d2 > 1e-12) & (d2 < cutoff * cutoff)               # 0 < d < cutoff
    dist = jnp.sqrt(jnp.where(valid, d2, 1.0))                  # safe sqrt

    # cosine cutoff, hoisted out of the feature axis; validity folded into fc
    fc = 0.5 * (jnp.cos(dist * (math.pi / rc)) + 1.0)
    fc = jnp.where(valid, fc, 0.0)                              # (B, Ne, Na)

    # neighbour-element mask, computed once per image
    em = (elems[:, :, None] == jelem).astype(jnp.float32)       # (B, Na, F)

    # Gaussian per (pair, channel) and masked neighbour sum
    darg = dist[:, :, :, None] - rs                             # (B, Ne, Na, F)
    gauss = jnp.exp(-eta * darg * darg)
    sf = jnp.sum(gauss * fc[:, :, :, None] * em[:, None, :, :],
                 axis=2)                                        # (B, Ne, F)

    # ---- per-element MLP (Linear + BatchNorm(train) + Sigmoid, out Linear) ---
    inv_m = 1.0 / float(M)

    def bn_sigmoid_block(h, w, b, gamma, beta):
        wb = jnp.broadcast_to(w, (B,) + w.shape)                # hoisted, 1x/layer
        h = jnp.einsum('bnf,bfl->bnl', h, wb,
                       preferred_element_type=jnp.float32) + b  # Linear
        s = jnp.sum(jnp.sum(h, axis=1, keepdims=True), axis=0, keepdims=True)
        mean = s * inv_m
        d = h - mean
        v = jnp.sum(jnp.sum(d * d, axis=1, keepdims=True),
                    axis=0, keepdims=True) * inv_m              # biased (train)
        h = d * lax.rsqrt(v + bn_eps) * gamma + beta            # BatchNorm1d
        return pl.reciprocal(1.0 + jnp.exp(-h), approx=True)    # Sigmoid (EUP)

    h = bn_sigmoid_block(sf, w_in_ref[0], b_in_ref[0],
                         g_in_ref[0], be_in_ref[0])
    for l in range(n_hidden):                                   # small static
        h = bn_sigmoid_block(h, w_h_ref[l], b_h_ref[l],
                             g_h_ref[l], be_h_ref[l])

    # final Linear(L, 1) as a lane reduction, then per-image energy sum
    w_out = w_out_ref[0]                                        # (1, L)
    b_out = b_out_ref[0]                                        # (1, 1)
    per_atom = jnp.sum(h * w_out, axis=-1, keepdims=True) + b_out   # (B, Ne, 1)
    out_ref[0] = jnp.sum(per_atom, axis=1)                      # (B, 1)


# ----------------------------------------------------------------------------
# Wrapper
# ----------------------------------------------------------------------------
def _fixed_spec(shape):
    n = len(shape)

    def imap(e):
        return (0,) * n
    return pl.BlockSpec(shape, imap)


def _per_elem_spec(shape):
    n = len(shape)

    def imap(e):
        return (e,) + (0,) * (n - 1)
    return pl.BlockSpec(shape, imap)


def bpnnp_forward(coords, elems, elem_order, sf_stacked, mlp_stacked,
                  cutoff, bn_eps=1e-5):
    """coords: (B, Na, 3) f32; elems: (B, Na) int32.  Atoms of every image must
    be grouped by element (order = elem_order) with equal counts per element."""
    eta_all, rs_all, rc_all, jelem_all = sf_stacked
    (w_in_all, b_in_all, g_in_all, be_in_all,
     w_h, b_h, g_h, be_h, w_out_all, b_out_all) = mlp_stacked

    B, Na, _ = coords.shape
    n_elems = len(elem_order)
    n_e = Na // n_elems
    F = eta_all.shape[-1]
    L0 = w_in_all.shape[-1]
    L = w_h.shape[-1]
    n_hidden = w_h.shape[0]

    rc_flat = jnp.asarray(rc_all, jnp.float32).reshape(-1)
    rc0 = float(rc_flat[0])
    if bool(jnp.any(rc_flat != rc0)):
        raise ValueError("hoisted cosine cutoff requires a single uniform R_c")

    # pad xyz axis 3 -> 8 so the distance contraction is an aligned matmul
    coords = jnp.pad(coords.astype(jnp.float32), ((0, 0), (0, 0), (0, 5)))
    ctr = coords.reshape(B, n_elems, n_e, 8).transpose(1, 0, 2, 3)  # (E,B,Ne,8)
    elems = elems.astype(jnp.int32)

    eta3 = eta_all.reshape(n_elems, 1, F).astype(jnp.float32)
    rs3 = rs_all.reshape(n_elems, 1, F).astype(jnp.float32)
    jelem3 = jelem_all.reshape(n_elems, 1, F).astype(jnp.int32)

    kernel = functools.partial(_bpnnp_fused_kernel, cutoff=float(cutoff),
                               rc=rc0, n_hidden=int(n_hidden),
                               bn_eps=float(bn_eps))

    out = pl.pallas_call(
        kernel,
        out_shape=jax.ShapeDtypeStruct((n_elems, B, 1), jnp.float32),
        grid=(n_elems,),
        in_specs=[
            _fixed_spec((B, Na, 8)),            # coords (all atoms, padded xyz)
            _per_elem_spec((1, B, n_e, 8)),     # centre atoms of this element
            _fixed_spec((B, Na)),               # atomic numbers
            _per_elem_spec((1, 1, F)),          # eta
            _per_elem_spec((1, 1, F)),          # R_s
            _per_elem_spec((1, 1, F)),          # j_elem
            _per_elem_spec((1, F, L0)),         # W_in
            _per_elem_spec((1, 1, L0)),         # b_in
            _per_elem_spec((1, 1, L0)),         # BN gamma_in
            _per_elem_spec((1, 1, L0)),         # BN beta_in
            _fixed_spec((n_hidden, L, L)),      # shared hidden W
            _fixed_spec((n_hidden, 1, L)),      # shared hidden b
            _fixed_spec((n_hidden, 1, L)),      # shared hidden gamma
            _fixed_spec((n_hidden, 1, L)),      # shared hidden beta
            _per_elem_spec((1, 1, L)),          # W_out (row form)
            _per_elem_spec((1, 1, 1)),          # b_out
        ],
        out_specs=_per_elem_spec((1, B, 1)),
        compiler_params=pltpu.CompilerParams(
            dimension_semantics=("parallel",),
            vmem_limit_bytes=32 * 1024 * 1024),
    )(coords, ctr, elems, eta3, rs3, jelem3,
      w_in_all, b_in_all, g_in_all, be_in_all,
      w_h, b_h, g_h, be_h, w_out_all, b_out_all)

    energy = jnp.sum(out[:, :, 0], axis=0)      # (B,) total energy per image
    # TODO(synk): forces = -dE/dcoord omitted (needs custom VJP through kernel)
    return {'energy': energy}


def init_linear(key, fan_in, fan_out):
    k1, k2 = jax.random.split(key)
    bound = 1.0 / math.sqrt(fan_in)
    w = jax.random.uniform(k1, (fan_in, fan_out), jnp.float32, -bound, bound)
    b = jax.random.uniform(k2, (1, fan_out), jnp.float32, -bound, bound)
    return w, b


if __name__ == "__main__":
    key = jax.random.PRNGKey(0)
    B, Na = 2, 8                       # 2 images, 8 atoms each (4 H + 4 O)
    n_h_atoms, n_o_atoms = 4, 4
    cutoff = 5.0
    layer_size = [32, 32]
    elem_order = ('H', 'O')
    n_elems = len(elem_order)

    # sf_spec: per centre element, two G2 specs (neighbour elem H=1, O=8),
    # each with 8 (eta, R_s, R_c) channels -> F = 16 fingerprint features.
    n_ch = 8
    F = 2 * n_ch
    eta_vals = jnp.linspace(0.5, 2.0, n_ch)
    rs_vals = jnp.linspace(0.0, 3.0, n_ch)
    rc_vals = jnp.full((n_ch,), cutoff, jnp.float32)
    eta = jnp.concatenate([eta_vals, eta_vals])
    rs = jnp.concatenate([rs_vals, rs_vals])
    rc = jnp.concatenate([rc_vals, rc_vals])
    jelem = jnp.concatenate([jnp.full((n_ch,), 1, jnp.int32),
                             jnp.full((n_ch,), 8, jnp.int32)])
    sf_stacked = (jnp.stack([eta] * n_elems),      # (E, F)
                  jnp.stack([rs] * n_elems),
                  jnp.stack([rc] * n_elems),
                  jnp.stack([jelem] * n_elems))

    kc, key = jax.random.split(key)
    coords = jax.random.uniform(kc, (B, Na, 3), jnp.float32, 0.0, 4.0)
    elems = jnp.tile(jnp.array([1] * n_h_atoms + [8] * n_o_atoms, jnp.int32),
                     (B, 1))

    # Parameters.  Hidden layers are SHARED between elements (the PyTorch
    # module puts the same nn.Sequential objects in every element's list).
    n_hidden = len(layer_size) - 1
    L0, L = layer_size[0], layer_size[-1]
    kh, key = jax.random.split(key)
    w_h_list, b_h_list = [], []
    for i in range(n_hidden):
        kh, sub = jax.random.split(kh)
        w, b = init_linear(sub, layer_size[i], layer_size[i + 1])
        w_h_list.append(w)
        b_h_list.append(b.reshape(1, 1, layer_size[i + 1]))
    w_h = jnp.stack(w_h_list, axis=0)                       # (nH, L, L)
    b_h = jnp.concatenate(b_h_list, axis=0)                 # (nH, 1, L)
    g_h = jnp.ones((n_hidden, 1, L), jnp.float32)
    be_h = jnp.zeros((n_hidden, 1, L), jnp.float32)

    w_in_list, b_in_list, w_out_list, b_out_list = [], [], [], []
    for _elem in elem_order:
        key, k1, k2 = jax.random.split(key, 3)
        w_in, b_in = init_linear(k1, F, L0)
        w_out, b_out = init_linear(k2, L, 1)
        w_in_list.append(w_in)
        b_in_list.append(b_in.reshape(1, 1, L0))
        w_out_list.append(w_out.T.reshape(1, 1, L))         # row form
        b_out_list.append(b_out.reshape(1, 1, 1))
    mlp_stacked = (jnp.stack(w_in_list, axis=0),            # (E, F, L0)
                   jnp.concatenate(b_in_list, axis=0),      # (E, 1, L0)
                   jnp.ones((n_elems, 1, L0), jnp.float32),
                   jnp.zeros((n_elems, 1, L0), jnp.float32),
                   w_h, b_h, g_h, be_h,
                   jnp.concatenate(w_out_list, axis=0),     # (E, 1, L)
                   jnp.concatenate(b_out_list, axis=0))     # (E, 1, 1)

    out = bpnnp_forward(coords, elems, elem_order, sf_stacked, mlp_stacked,
                        cutoff)
    energy = jax.block_until_ready(out['energy'])
    assert energy.shape == (B,)
    assert bool(jnp.all(jnp.isfinite(energy)))
    print("KERNEL_OK")
</pallas_src>

<mosaic_0001>
module attributes {stable_mosaic.version = 11 : i64} {
  func.func @_bpnnp_fused_kernel(%arg0: i32, %arg1: memref<2x8x8xf32, #tpu.memory_space<vmem>>, %arg2: memref<1x2x4x8xf32, #tpu.memory_space<vmem>>, %arg3: memref<2x8xi32, #tpu.memory_space<vmem>>, %arg4: memref<1x1x16xf32, #tpu.memory_space<vmem>>, %arg5: memref<1x1x16xf32, #tpu.memory_space<vmem>>, %arg6: memref<1x1x16xi32, #tpu.memory_space<vmem>>, %arg7: memref<1x16x32xf32, #tpu.memory_space<vmem>>, %arg8: memref<1x1x32xf32, #tpu.memory_space<vmem>>, %arg9: memref<1x1x32xf32, #tpu.memory_space<vmem>>, %arg10: memref<1x1x32xf32, #tpu.memory_space<vmem>>, %arg11: memref<1x32x32xf32, #tpu.memory_space<vmem>>, %arg12: memref<1x1x32xf32, #tpu.memory_space<vmem>>, %arg13: memref<1x1x32xf32, #tpu.memory_space<vmem>>, %arg14: memref<1x1x32xf32, #tpu.memory_space<vmem>>, %arg15: memref<1x1x32xf32, #tpu.memory_space<vmem>>, %arg16: memref<1x1x1xf32, #tpu.memory_space<vmem>>, %arg17: memref<1x2x1xf32, #tpu.memory_space<vmem>>) attributes {dimension_semantics = [#tpu.dimension_semantics<parallel>], iteration_bounds = array<i64: 2>, scalar_prefetch = 0 : i64, scratch_operands = 0 : i64, tpu.core_type = #tpu.core_type<tc>, window_params = [{pipeline_mode = #tpu.pipeline_mode<synchronous>, transform_indices = @transform_0, window_bounds = array<i64: 2, 8, 8>}, {transform_indices = @transform_1, window_bounds = array<i64: 1, 2, 4, 8>}, {pipeline_mode = #tpu.pipeline_mode<synchronous>, transform_indices = @transform_2, window_bounds = array<i64: 2, 8>}, {transform_indices = @transform_3, window_bounds = array<i64: 1, 1, 16>}, {transform_indices = @transform_4, window_bounds = array<i64: 1, 1, 16>}, {transform_indices = @transform_5, window_bounds = array<i64: 1, 1, 16>}, {transform_indices = @transform_6, window_bounds = array<i64: 1, 16, 32>}, {transform_indices = @transform_7, window_bounds = array<i64: 1, 1, 32>}, {transform_indices = @transform_8, window_bounds = array<i64: 1, 1, 32>}, {transform_indices = @transform_9, window_bounds = array<i64: 1, 1, 32>}, {pipeline_mode = #tpu.pipeline_mode<synchronous>, transform_indices = @transform_10, window_bounds = array<i64: 1, 32, 32>}, {pipeline_mode = #tpu.pipeline_mode<synchronous>, transform_indices = @transform_11, window_bounds = array<i64: 1, 1, 32>}, {pipeline_mode = #tpu.pipeline_mode<synchronous>, transform_indices = @transform_12, window_bounds = array<i64: 1, 1, 32>}, {pipeline_mode = #tpu.pipeline_mode<synchronous>, transform_indices = @transform_13, window_bounds = array<i64: 1, 1, 32>}, {transform_indices = @transform_14, window_bounds = array<i64: 1, 1, 32>}, {transform_indices = @transform_15, window_bounds = array<i64: 1, 1, 1>}, {transform_indices = @transform_16, window_bounds = array<i64: 1, 2, 1>}]} {
    %c0 = arith.constant 0 : index
    %c0_0 = arith.constant 0 : index
    %c0_1 = arith.constant 0 : index
    %0 = vector.load %arg1[%c0, %c0_0, %c0_1] : memref<2x8x8xf32, #tpu.memory_space<vmem>>, vector<2x8x8xf32>
    %c0_2 = arith.constant 0 : index
    %c0_3 = arith.constant 0 : index
    %c0_4 = arith.constant 0 : index
    %c0_5 = arith.constant 0 : index
    %1 = vector.load %arg2[%c0_2, %c0_3, %c0_4, %c0_5] : memref<1x2x4x8xf32, #tpu.memory_space<vmem>>, vector<1x2x4x8xf32>
    %2 = vector.shape_cast %1 : vector<1x2x4x8xf32> to vector<2x4x8xf32>
    %c0_6 = arith.constant 0 : index
    %c0_7 = arith.constant 0 : index
    %3 = vector.load %arg3[%c0_6, %c0_7] : memref<2x8xi32, #tpu.memory_space<vmem>>, vector<2x8xi32>
    %c0_8 = arith.constant 0 : index
    %c0_9 = arith.constant 0 : index
    %c0_10 = arith.constant 0 : index
    %4 = vector.load %arg4[%c0_8, %c0_9, %c0_10] : memref<1x1x16xf32, #tpu.memory_space<vmem>>, vector<1x1x16xf32>
    %5 = vector.shape_cast %4 : vector<1x1x16xf32> to vector<1x16xf32>
    %c0_11 = arith.constant 0 : index
    %c0_12 = arith.constant 0 : index
    %c0_13 = arith.constant 0 : index
    %6 = vector.load %arg5[%c0_11, %c0_12, %c0_13] : memref<1x1x16xf32, #tpu.memory_space<vmem>>, vector<1x1x16xf32>
    %7 = vector.shape_cast %6 : vector<1x1x16xf32> to vector<1x16xf32>
    %c0_14 = arith.constant 0 : index
    %c0_15 = arith.constant 0 : index
    %c0_16 = arith.constant 0 : index
    %8 = vector.load %arg6[%c0_14, %c0_15, %c0_16] : memref<1x1x16xi32, #tpu.memory_space<vmem>>, vector<1x1x16xi32>
    %9 = vector.shape_cast %8 : vector<1x1x16xi32> to vector<1x16xi32>
    "tpu.trace_start"() <{level = 10 : i32, message = "bnd,bmd->bnm"}> : () -> ()
    %cst = arith.constant dense<0.000000e+00> : vector<2x4x8xf32>
    %10 = tpu.matmul %2, %0, %cst {dimension_numbers = #tpu.dot_dimension_numbers<[2], [2], [1], [1], [0, 0, 0, 1, 1, 1], [0], [0]>} : vector<2x4x8xf32>, vector<2x8x8xf32>, vector<2x4x8xf32> -> vector<2x4x8xf32>
    "tpu.trace_stop"() : () -> ()
    %11 = arith.mulf %2, %2 : vector<2x4x8xf32>
    %cst_17 = arith.constant dense<0.000000e+00> : vector<2x4xf32>
    %12 = vector.multi_reduction <add>, %11, %cst_17 [2] : vector<2x4x8xf32> to vector<2x4xf32>
    %13 = arith.mulf %0, %0 : vector<2x8x8xf32>
    %cst_18 = arith.constant dense<0.000000e+00> : vector<2x8xf32>
    %14 = vector.multi_reduction <add>, %13, %cst_18 [2] : vector<2x8x8xf32> to vector<2x8xf32>
    %15 = vector.shape_cast %12 : vector<2x4xf32> to vector<2x4x1xf32>
    %16 = vector.shape_cast %14 : vector<2x8xf32> to vector<2x1x8xf32>
    %17 = vector.broadcast %15 : vector<2x4x1xf32> to vector<2x4x8xf32>
    %18 = vector.broadcast %16 : vector<2x1x8xf32> to vector<2x4x8xf32>
    %19 = arith.addf %17, %18 : vector<2x4x8xf32>
    %cst_19 = arith.constant 2.000000e+00 : f32
    %20 = vector.broadcast %cst_19 : f32 to vector<2x4x8xf32>
    %21 = arith.mulf %20, %10 : vector<2x4x8xf32>
    %22 = arith.subf %19, %21 : vector<2x4x8xf32>
    %cst_20 = arith.constant 0.000000e+00 : f32
    %23 = vector.broadcast %cst_20 : f32 to vector<2x4x8xf32>
    %24 = arith.maximumf %22, %23 : vector<2x4x8xf32>
    %cst_21 = arith.constant 9.99999996E-13 : f32
    %25 = vector.broadcast %cst_21 : f32 to vector<2x4x8xf32>
    %26 = arith.cmpf ogt, %24, %25 : vector<2x4x8xf32>
    %cst_22 = arith.constant 2.500000e+01 : f32
    %27 = vector.broadcast %cst_22 : f32 to vector<2x4x8xf32>
    %28 = arith.cmpf olt, %24, %27 : vector<2x4x8xf32>
    %29 = arith.andi %26, %28 : vector<2x4x8xi1>
    %cst_23 = arith.constant 1.000000e+00 : f32
    %30 = vector.broadcast %cst_23 : f32 to vector<2x4x8xf32>
    %31 = arith.select %29, %24, %30 : vector<2x4x8xi1>, vector<2x4x8xf32>
    %32 = math.sqrt %31 : vector<2x4x8xf32>
    %cst_24 = arith.constant 0.628318548 : f32
    %33 = vector.broadcast %cst_24 : f32 to vector<2x4x8xf32>
    %34 = arith.mulf %32, %33 : vector<2x4x8xf32>
    %35 = math.cos %34 : vector<2x4x8xf32>
    %cst_25 = arith.constant 1.000000e+00 : f32
    %36 = vector.broadcast %cst_25 : f32 to vector<2x4x8xf32>
    %37 = arith.addf %35, %36 : vector<2x4x8xf32>
    %cst_26 = arith.constant 5.000000e-01 : f32
    %38 = vector.broadcast %cst_26 : f32 to vector<2x4x8xf32>
    %39 = arith.mulf %38, %37 : vector<2x4x8xf32>
    %cst_27 = arith.constant 0.000000e+00 : f32
    %40 = vector.broadcast %cst_27 : f32 to vector<2x4x8xf32>
    %41 = arith.select %29, %39, %40 : vector<2x4x8xi1>, vector<2x4x8xf32>
    %42 = vector.shape_cast %3 : vector<2x8xi32> to vector<2x8x1xi32>
    %43 = vector.shape_cast %9 : vector<1x16xi32> to vector<1x1x16xi32>
    %44 = vector.broadcast %42 : vector<2x8x1xi32> to vector<2x8x16xi32>
    %45 = vector.broadcast %43 : vector<1x1x16xi32> to vector<2x8x16xi32>
    %46 = arith.cmpi eq, %44, %45 : vector<2x8x16xi32>
    %47 = arith.extui %46 : vector<2x8x16xi1> to vector<2x8x16xi32>
    %48 = arith.sitofp %47 : vector<2x8x16xi32> to vector<2x8x16xf32>
    %49 = vector.shape_cast %32 : vector<2x4x8xf32> to vector<2x4x8x1xf32>
    %50 = vector.shape_cast %7 : vector<1x16xf32> to vector<1x1x1x16xf32>
    %51 = vector.broadcast %49 : vector<2x4x8x1xf32> to vector<2x4x8x16xf32>
    %52 = vector.broadcast %50 : vector<1x1x1x16xf32> to vector<2x4x8x16xf32>
    %53 = arith.subf %51, %52 : vector<2x4x8x16xf32>
    %cst_28 = arith.constant 0.000000e+00 : f32
    %54 = vector.broadcast %cst_28 : f32 to vector<1x16xf32>
    %55 = arith.subf %54, %5 : vector<1x16xf32>
    %56 = vector.shape_cast %55 : vector<1x16xf32> to vector<1x1x1x16xf32>
    %57 = vector.broadcast %56 : vector<1x1x1x16xf32> to vector<2x4x8x16xf32>
    %58 = arith.mulf %57, %53 : vector<2x4x8x16xf32>
    %59 = arith.mulf %58, %53 : vector<2x4x8x16xf32>
    %60 = math.exp %59 : vector<2x4x8x16xf32>
    %61 = vector.shape_cast %41 : vector<2x4x8xf32> to vector<2x4x8x1xf32>
    %62 = vector.broadcast %61 : vector<2x4x8x1xf32> to vector<2x4x8x16xf32>
    %63 = arith.mulf %60, %62 : vector<2x4x8x16xf32>
    %64 = vector.shape_cast %48 : vector<2x8x16xf32> to vector<2x1x8x16xf32>
    %65 = vector.broadcast %64 : vector<2x1x8x16xf32> to vector<2x4x8x16xf32>
    %66 = arith.mulf %63, %65 : vector<2x4x8x16xf32>
    %cst_29 = arith.constant dense<0.000000e+00> : vector<2x4x16xf32>
    %67 = vector.multi_reduction <add>, %66, %cst_29 [2] : vector<2x4x8x16xf32> to vector<2x4x16xf32>
    %c0_30 = arith.constant 0 : index
    %c0_31 = arith.constant 0 : index
    %c0_32 = arith.constant 0 : index
    %68 = vector.load %arg7[%c0_30, %c0_31, %c0_32] : memref<1x16x32xf32, #tpu.memory_space<vmem>>, vector<1x16x32xf32>
    %69 = vector.shape_cast %68 : vector<1x16x32xf32> to vector<16x32xf32>
    %c0_33 = arith.constant 0 : index
    %c0_34 = arith.constant 0 : index
    %c0_35 = arith.constant 0 : index
    %70 = vector.load %arg8[%c0_33, %c0_34, %c0_35] : memref<1x1x32xf32, #tpu.memory_space<vmem>>, vector<1x1x32xf32>
    %71 = vector.shape_cast %70 : vector<1x1x32xf32> to vector<1x32xf32>
    %c0_36 = arith.constant 0 : index
    %c0_37 = arith.constant 0 : index
    %c0_38 = arith.constant 0 : index
    %72 = vector.load %arg9[%c0_36, %c0_37, %c0_38] : memref<1x1x32xf32, #tpu.memory_space<vmem>>, vector<1x1x32xf32>
    %73 = vector.shape_cast %72 : vector<1x1x32xf32> to vector<1x32xf32>
    %c0_39 = arith.constant 0 : index
    %c0_40 = arith.constant 0 : index
    %c0_41 = arith.constant 0 : index
    %74 = vector.load %arg10[%c0_39, %c0_40, %c0_41] : memref<1x1x32xf32, #tpu.memory_space<vmem>>, vector<1x1x32xf32>
    %75 = vector.shape_cast %74 : vector<1x1x32xf32> to vector<1x32xf32>
    %76 = vector.shape_cast %69 : vector<16x32xf32> to vector<1x16x32xf32>
    %77 = vector.broadcast %76 : vector<1x16x32xf32> to vector<2x16x32xf32>
    "tpu.trace_start"() <{level = 10 : i32, message = "bnf,bfl->bnl"}> : () -> ()
    %cst_42 = arith.constant dense<0.000000e+00> : vector<2x4x32xf32>
    %78 = tpu.matmul %67, %77, %cst_42 {dimension_numbers = #tpu.dot_dimension_numbers<[2], [1], [1], [2], [0, 0, 0, 1, 1, 2], [0], [0]>} : vector<2x4x16xf32>, vector<2x16x32xf32>, vector<2x4x32xf32> -> vector<2x4x32xf32>
    "tpu.trace_stop"() : () -> ()
    %79 = vector.shape_cast %71 : vector<1x32xf32> to vector<1x1x32xf32>
    %80 = vector.broadcast %79 : vector<1x1x32xf32> to vector<2x4x32xf32>
    %81 = arith.addf %78, %80 : vector<2x4x32xf32>
    %cst_43 = arith.constant dense<0.000000e+00> : vector<2x32xf32>
    %82 = vector.multi_reduction <add>, %81, %cst_43 [1] : vector<2x4x32xf32> to vector<2x32xf32>
    %83 = vector.shape_cast %82 : vector<2x32xf32> to vector<2x1x32xf32>
    %cst_44 = arith.constant dense<0.000000e+00> : vector<1x32xf32>
    %84 = vector.multi_reduction <add>, %83, %cst_44 [0] : vector<2x1x32xf32> to vector<1x32xf32>
    %85 = vector.shape_cast %84 : vector<1x32xf32> to vector<1x1x32xf32>
    %cst_45 = arith.constant 1.250000e-01 : f32
    %86 = vector.broadcast %cst_45 : f32 to vector<1x1x32xf32>
    %87 = arith.mulf %85, %86 : vector<1x1x32xf32>
    %88 = vector.broadcast %87 : vector<1x1x32xf32> to vector<2x4x32xf32>
    %89 = arith.subf %81, %88 : vector<2x4x32xf32>
    %90 = arith.mulf %89, %89 : vector<2x4x32xf32>
    %cst_46 = arith.constant dense<0.000000e+00> : vector<2x32xf32>
    %91 = vector.multi_reduction <add>, %90, %cst_46 [1] : vector<2x4x32xf32> to vector<2x32xf32>
    %92 = vector.shape_cast %91 : vector<2x32xf32> to vector<2x1x32xf32>
    %cst_47 = arith.constant dense<0.000000e+00> : vector<1x32xf32>
    %93 = vector.multi_reduction <add>, %92, %cst_47 [0] : vector<2x1x32xf32> to vector<1x32xf32>
    %94 = vector.shape_cast %93 : vector<1x32xf32> to vector<1x1x32xf32>
    %cst_48 = arith.constant 1.250000e-01 : f32
    %95 = vector.broadcast %cst_48 : f32 to vector<1x1x32xf32>
    %96 = arith.mulf %94, %95 : vector<1x1x32xf32>
    %cst_49 = arith.constant 9.99999974E-6 : f32
    %97 = vector.broadcast %cst_49 : f32 to vector<1x1x32xf32>
    %98 = arith.addf %96, %97 : vector<1x1x32xf32>
    %99 = math.rsqrt %98 : vector<1x1x32xf32>
    %100 = vector.broadcast %99 : vector<1x1x32xf32> to vector<2x4x32xf32>
    %101 = arith.mulf %89, %100 : vector<2x4x32xf32>
    %102 = vector.shape_cast %73 : vector<1x32xf32> to vector<1x1x32xf32>
    %103 = vector.broadcast %102 : vector<1x1x32xf32> to vector<2x4x32xf32>
    %104 = arith.mulf %101, %103 : vector<2x4x32xf32>
    %105 = vector.shape_cast %75 : vector<1x32xf32> to vector<1x1x32xf32>
    %106 = vector.broadcast %105 : vector<1x1x32xf32> to vector<2x4x32xf32>
    %107 = arith.addf %104, %106 : vector<2x4x32xf32>
    %cst_50 = arith.constant 0.000000e+00 : f32
    %108 = vector.broadcast %cst_50 : f32 to vector<2x4x32xf32>
    %109 = arith.subf %108, %107 : vector<2x4x32xf32>
    %110 = math.exp %109 : vector<2x4x32xf32>
    %cst_51 = arith.constant 1.000000e+00 : f32
    %111 = vector.broadcast %cst_51 : f32 to vector<2x4x32xf32>
    %112 = arith.addf %111, %110 : vector<2x4x32xf32>
    %113 = tpu.reciprocal %112 {approx = true} : vector<2x4x32xf32> -> vector<2x4x32xf32>
    %c0_52 = arith.constant 0 : index
    %c0_53 = arith.constant 0 : index
    %c0_54 = arith.constant 0 : index
    %114 = vector.load %arg11[%c0_52, %c0_53, %c0_54] : memref<1x32x32xf32, #tpu.memory_space<vmem>>, vector<1x32x32xf32>
    %115 = vector.shape_cast %114 : vector<1x32x32xf32> to vector<32x32xf32>
    %c0_55 = arith.constant 0 : index
    %c0_56 = arith.constant 0 : index
    %c0_57 = arith.constant 0 : index
    %116 = vector.load %arg12[%c0_55, %c0_56, %c0_57] : memref<1x1x32xf32, #tpu.memory_space<vmem>>, vector<1x1x32xf32>
    %117 = vector.shape_cast %116 : vector<1x1x32xf32> to vector<1x32xf32>
    %c0_58 = arith.constant 0 : index
    %c0_59 = arith.constant 0 : index
    %c0_60 = arith.constant 0 : index
    %118 = vector.load %arg13[%c0_58, %c0_59, %c0_60] : memref<1x1x32xf32, #tpu.memory_space<vmem>>, vector<1x1x32xf32>
    %119 = vector.shape_cast %118 : vector<1x1x32xf32> to vector<1x32xf32>
    %c0_61 = arith.constant 0 : index
    %c0_62 = arith.constant 0 : index
    %c0_63 = arith.constant 0 : index
    %120 = vector.load %arg14[%c0_61, %c0_62, %c0_63] : memref<1x1x32xf32, #tpu.memory_space<vmem>>, vector<1x1x32xf32>
    %121 = vector.shape_cast %120 : vector<1x1x32xf32> to vector<1x32xf32>
    %122 = vector.shape_cast %115 : vector<32x32xf32> to vector<1x32x32xf32>
    %123 = vector.broadcast %122 : vector<1x32x32xf32> to vector<2x32x32xf32>
    "tpu.trace_start"() <{level = 10 : i32, message = "bnf,bfl->bnl"}> : () -> ()
    %cst_64 = arith.constant dense<0.000000e+00> : vector<2x4x32xf32>
    %124 = tpu.matmul %113, %123, %cst_64 {dimension_numbers = #tpu.dot_dimension_numbers<[2], [1], [1], [2], [0, 0, 0, 1, 1, 2], [0], [0]>} : vector<2x4x32xf32>, vector<2x32x32xf32>, vector<2x4x32xf32> -> vector<2x4x32xf32>
    "tpu.trace_stop"() : () -> ()
    %125 = vector.shape_cast %117 : vector<1x32xf32> to vector<1x1x32xf32>
    %126 = vector.broadcast %125 : vector<1x1x32xf32> to vector<2x4x32xf32>
    %127 = arith.addf %124, %126 : vector<2x4x32xf32>
    %cst_65 = arith.constant dense<0.000000e+00> : vector<2x32xf32>
    %128 = vector.multi_reduction <add>, %127, %cst_65 [1] : vector<2x4x32xf32> to vector<2x32xf32>
    %129 = vector.shape_cast %128 : vector<2x32xf32> to vector<2x1x32xf32>
    %cst_66 = arith.constant dense<0.000000e+00> : vector<1x32xf32>
    %130 = vector.multi_reduction <add>, %129, %cst_66 [0] : vector<2x1x32xf32> to vector<1x32xf32>
    %131 = vector.shape_cast %130 : vector<1x32xf32> to vector<1x1x32xf32>
    %cst_67 = arith.constant 1.250000e-01 : f32
    %132 = vector.broadcast %cst_67 : f32 to vector<1x1x32xf32>
    %133 = arith.mulf %131, %132 : vector<1x1x32xf32>
    %134 = vector.broadcast %133 : vector<1x1x32xf32> to vector<2x4x32xf32>
    %135 = arith.subf %127, %134 : vector<2x4x32xf32>
    %136 = arith.mulf %135, %135 : vector<2x4x32xf32>
    %cst_68 = arith.constant dense<0.000000e+00> : vector<2x32xf32>
    %137 = vector.multi_reduction <add>, %136, %cst_68 [1] : vector<2x4x32xf32> to vector<2x32xf32>
    %138 = vector.shape_cast %137 : vector<2x32xf32> to vector<2x1x32xf32>
    %cst_69 = arith.constant dense<0.000000e+00> : vector<1x32xf32>
    %139 = vector.multi_reduction <add>, %138, %cst_69 [0] : vector<2x1x32xf32> to vector<1x32xf32>
    %140 = vector.shape_cast %139 : vector<1x32xf32> to vector<1x1x32xf32>
    %cst_70 = arith.constant 1.250000e-01 : f32
    %141 = vector.broadcast %cst_70 : f32 to vector<1x1x32xf32>
    %142 = arith.mulf %140, %141 : vector<1x1x32xf32>
    %cst_71 = arith.constant 9.99999974E-6 : f32
    %143 = vector.broadcast %cst_71 : f32 to vector<1x1x32xf32>
    %144 = arith.addf %142, %143 : vector<1x1x32xf32>
    %145 = math.rsqrt %144 : vector<1x1x32xf32>
    %146 = vector.broadcast %145 : vector<1x1x32xf32> to vector<2x4x32xf32>
    %147 = arith.mulf %135, %146 : vector<2x4x32xf32>
    %148 = vector.shape_cast %119 : vector<1x32xf32> to vector<1x1x32xf32>
    %149 = vector.broadcast %148 : vector<1x1x32xf32> to vector<2x4x32xf32>
    %150 = arith.mulf %147, %149 : vector<2x4x32xf32>
    %151 = vector.shape_cast %121 : vector<1x32xf32> to vector<1x1x32xf32>
    %152 = vector.broadcast %151 : vector<1x1x32xf32> to vector<2x4x32xf32>
    %153 = arith.addf %150, %152 : vector<2x4x32xf32>
    %cst_72 = arith.constant 0.000000e+00 : f32
    %154 = vector.broadcast %cst_72 : f32 to vector<2x4x32xf32>
    %155 = arith.subf %154, %153 : vector<2x4x32xf32>
    %156 = math.exp %155 : vector<2x4x32xf32>
    %cst_73 = arith.constant 1.000000e+00 : f32
    %157 = vector.broadcast %cst_73 : f32 to vector<2x4x32xf32>
    %158 = arith.addf %157, %156 : vector<2x4x32xf32>
    %159 = tpu.reciprocal %158 {approx = true} : vector<2x4x32xf32> -> vector<2x4x32xf32>
    %c0_74 = arith.constant 0 : index
    %c0_75 = arith.constant 0 : index
    %c0_76 = arith.constant 0 : index
    %160 = vector.load %arg15[%c0_74, %c0_75, %c0_76] : memref<1x1x32xf32, #tpu.memory_space<vmem>>, vector<1x1x32xf32>
    %161 = vector.shape_cast %160 : vector<1x1x32xf32> to vector<1x32xf32>
    %c0_77 = arith.constant 0 : index
    %c0_78 = arith.constant 0 : index
    %c0_79 = arith.constant 0 : index
    %162 = vector.load %arg16[%c0_77, %c0_78, %c0_79] : memref<1x1x1xf32, #tpu.memory_space<vmem>>, vector<1x1x1xf32>
    %163 = vector.shape_cast %162 : vector<1x1x1xf32> to vector<1x1xf32>
    %164 = vector.shape_cast %161 : vector<1x32xf32> to vector<1x1x32xf32>
    %165 = vector.broadcast %164 : vector<1x1x32xf32> to vector<2x4x32xf32>
    %166 = arith.mulf %159, %165 : vector<2x4x32xf32>
    %cst_80 = arith.constant dense<0.000000e+00> : vector<2x4xf32>
    %167 = vector.multi_reduction <add>, %166, %cst_80 [2] : vector<2x4x32xf32> to vector<2x4xf32>
    %168 = vector.shape_cast %167 : vector<2x4xf32> to vector<2x4x1xf32>
    %169 = vector.shape_cast %163 : vector<1x1xf32> to vector<1x1x1xf32>
    %170 = vector.broadcast %169 : vector<1x1x1xf32> to vector<2x4x1xf32>
    %171 = arith.addf %168, %170 : vector<2x4x1xf32>
    %cst_81 = arith.constant dense<0.000000e+00> : vector<2x1xf32>
    %172 = vector.multi_reduction <add>, %171, %cst_81 [1] : vector<2x4x1xf32> to vector<2x1xf32>
    %c0_82 = arith.constant 0 : index
    %c0_83 = arith.constant 0 : index
    %c0_84 = arith.constant 0 : index
    %173 = vector.load %arg17[%c0_82, %c0_83, %c0_84] : memref<1x2x1xf32, #tpu.memory_space<vmem>>, vector<1x2x1xf32>
    %174 = vector.shape_cast %173 : vector<1x2x1xf32> to vector<2x1xf32>
    %175 = vector.shape_cast %172 : vector<2x1xf32> to vector<1x2x1xf32>
    tpu.vector_store %arg17[%c0_82, %c0_83, %c0_84], %175 {strides = array<i32>} : memref<1x2x1xf32, #tpu.memory_space<vmem>>, vector<1x2x1xf32>,
    return
  }
  func.func @transform_0(%arg0: i32) -> (i32, i32, i32) {
    %c0_i32 = arith.constant 0 : i32
    %c0_i32_0 = arith.constant 0 : i32
    %c0_i32_1 = arith.constant 0 : i32
    %c0_i32_2 = arith.constant 0 : i32
    return %c0_i32, %c0_i32_0, %c0_i32_1 : i32, i32, i32
  }
  func.func @transform_1(%arg0: i32) -> (i32, i32, i32, i32) {
    %c0_i32 = arith.constant 0 : i32
    %c0_i32_0 = arith.constant 0 : i32
    %c0_i32_1 = arith.constant 0 : i32
    %c0_i32_2 = arith.constant 0 : i32
    return %arg0, %c0_i32, %c0_i32_0, %c0_i32_1 : i32, i32, i32, i32
  }
  func.func @transform_2(%arg0: i32) -> (i32, i32) {
    %c0_i32 = arith.constant 0 : i32
    %c0_i32_0 = arith.constant 0 : i32
    %c0_i32_1 = arith.constant 0 : i32
    return %c0_i32, %c0_i32_0 : i32, i32
  }
  func.func @transform_3(%arg0: i32) -> (i32, i32, i32) {
    %c0_i32 = arith.constant 0 : i32
    %c0_i32_0 = arith.constant 0 : i32
    %c0_i32_1 = arith.constant 0 : i32
    return %arg0, %c0_i32, %c0_i32_0 : i32, i32, i32
  }
  func.func @transform_4(%arg0: i32) -> (i32, i32, i32) {
    %c0_i32 = arith.constant 0 : i32
    %c0_i32_0 = arith.constant 0 : i32
    %c0_i32_1 = arith.constant 0 : i32
    return %arg0, %c0_i32, %c0_i32_0 : i32, i32, i32
  }
  func.func @transform_5(%arg0: i32) -> (i32, i32, i32) {
    %c0_i32 = arith.constant 0 : i32
    %c0_i32_0 = arith.constant 0 : i32
    %c0_i32_1 = arith.constant 0 : i32
    return %arg0, %c0_i32, %c0_i32_0 : i32, i32, i32
  }
  func.func @transform_6(%arg0: i32) -> (i32, i32, i32) {
    %c0_i32 = arith.constant 0 : i32
    %c0_i32_0 = arith.constant 0 : i32
    %c0_i32_1 = arith.constant 0 : i32
    return %arg0, %c0_i32, %c0_i32_0 : i32, i32, i32
  }
  func.func @transform_7(%arg0: i32) -> (i32, i32, i32) {
    %c0_i32 = arith.constant 0 : i32
    %c0_i32_0 = arith.constant 0 : i32
    %c0_i32_1 = arith.constant 0 : i32
    return %arg0, %c0_i32, %c0_i32_0 : i32, i32, i32
  }
  func.func @transform_8(%arg0: i32) -> (i32, i32, i32) {
    %c0_i32 = arith.constant 0 : i32
    %c0_i32_0 = arith.constant 0 : i32
    %c0_i32_1 = arith.constant 0 : i32
    return %arg0, %c0_i32, %c0_i32_0 : i32, i32, i32
  }
  func.func @transform_9(%arg0: i32) -> (i32, i32, i32) {
    %c0_i32 = arith.constant 0 : i32
    %c0_i32_0 = arith.constant 0 : i32
    %c0_i32_1 = arith.constant 0 : i32
    return %arg0, %c0_i32, %c0_i32_0 : i32, i32, i32
  }
  func.func @transform_10(%arg0: i32) -> (i32, i32, i32) {
    %c0_i32 = arith.constant 0 : i32
    %c0_i32_0 = arith.constant 0 : i32
    %c0_i32_1 = arith.constant 0 : i32
    %c0_i32_2 = arith.constant 0 : i32
    return %c0_i32, %c0_i32_0, %c0_i32_1 : i32, i32, i32
  }
  func.func @transform_11(%arg0: i32) -> (i32, i32, i32) {
    %c0_i32 = arith.constant 0 : i32
    %c0_i32_0 = arith.constant 0 : i32
    %c0_i32_1 = arith.constant 0 : i32
    %c0_i32_2 = arith.constant 0 : i32
    return %c0_i32, %c0_i32_0, %c0_i32_1 : i32, i32, i32
  }
  func.func @transform_12(%arg0: i32) -> (i32, i32, i32) {
    %c0_i32 = arith.constant 0 : i32
    %c0_i32_0 = arith.constant 0 : i32
    %c0_i32_1 = arith.constant 0 : i32
    %c0_i32_2 = arith.constant 0 : i32
    return %c0_i32, %c0_i32_0, %c0_i32_1 : i32, i32, i32
  }
  func.func @transform_13(%arg0: i32) -> (i32, i32, i32) {
    %c0_i32 = arith.constant 0 : i32
    %c0_i32_0 = arith.constant 0 : i32
    %c0_i32_1 = arith.constant 0 : i32
    %c0_i32_2 = arith.constant 0 : i32
    return %c0_i32, %c0_i32_0, %c0_i32_1 : i32, i32, i32
  }
  func.func @transform_14(%arg0: i32) -> (i32, i32, i32) {
    %c0_i32 = arith.constant 0 : i32
    %c0_i32_0 = arith.constant 0 : i32
    %c0_i32_1 = arith.constant 0 : i32
    return %arg0, %c0_i32, %c0_i32_0 : i32, i32, i32
  }
  func.func @transform_15(%arg0: i32) -> (i32, i32, i32) {
    %c0_i32 = arith.constant 0 : i32
    %c0_i32_0 = arith.constant 0 : i32
    %c0_i32_1 = arith.constant 0 : i32
    return %arg0, %c0_i32, %c0_i32_0 : i32, i32, i32
  }
  func.func @transform_16(%arg0: i32) -> (i32, i32, i32) {
    %c0_i32 = arith.constant 0 : i32
    %c0_i32_0 = arith.constant 0 : i32
    %c0_i32_1 = arith.constant 0 : i32
    return %arg0, %c0_i32, %c0_i32_0 : i32, i32, i32
  }
}

</mosaic_0001>

<bundles_post_ra>
// kernel: tpu_custom_call.1
= control target key start
LH: loop header
LB: loop body
LE: loop exit
PB: predicated region body
PF: predicated region fallthrough
CT: control target
= control target key end

     0   :  { %s3067_s0 = inlined_call_operand.hbm [shape: f32[2,8,8], index: 0, kind: input, shape index: {}]   ;;  %s3068_s1 = inlined_call_operand.hbm [shape: f32[2,2,4,8], index: 1, kind: input, shape index: {}]   ;;  %s3069_s2 = inlined_call_operand.vmem [shape: s32[2,8], index: 2, kind: input, shape index: {}]   ;;  %s3070_s3 = inlined_call_operand.vmem [shape: f32[2,1,16], index: 3, kind: input, shape index: {}]   ;;  %s3071_s4 = inlined_call_operand.vmem [shape: f32[2,1,16], index: 4, kind: input, shape index: {}]   ;;  %s3072_s5 = inlined_call_operand.vmem [shape: s32[2,1,16], index: 5, kind: input, shape index: {}]   ;;  %s3073_s6 = inlined_call_operand.hbm [shape: f32[2,16,32], index: 6, kind: input, shape index: {}]   ;;  %s3074_s7 = inlined_call_operand.vmem [shape: f32[2,1,32], index: 7, kind: input, shape index: {}]   ;;  %s3075_s8 = inlined_call_operand.vmem [shape: f32[2,1,32], index: 8, kind: input, shape index: {}]   ;;  %s3076_s9 = inlined_call_operand.vmem [shape: f32[2,1,32], index: 9, kind: input, shape index: {}]   ;;  %s3077_s10 = inlined_call_operand.hbm [shape: f32[1,32,32], index: 10, kind: input, shape index: {}]   ;;  %s3078_s11 = inlined_call_operand.vmem [shape: f32[1,1,32], index: 11, kind: input, shape index: {}]   ;;  %s3079_s12 = inlined_call_operand.vmem [shape: f32[1,1,32], index: 12, kind: input, shape index: {}]   ;;  %s3080_s13 = inlined_call_operand.vmem [shape: f32[1,1,32], index: 13, kind: input, shape index: {}]   ;;  %s3081_s14 = inlined_call_operand.vmem [shape: f32[2,1,32], index: 14, kind: input, shape index: {}]   ;;  %s3082_s15 = inlined_call_operand.vmem [shape: f32[2,1,1], index: 15, kind: input, shape index: {}]   ;;  %s3083_s16 = inlined_call_operand.vmem [shape: f32[2,2,1], index: 16, kind: output, shape index: {}]  }
   0x1   :  { %3091 = sst [smem:[#allocation15_spill]] %s3067_s0 }
   0x2   :  { %3092 = sst [smem:[#allocation16_spill]] %s3068_s1 }
   0x3   :  { %3093 = sst [smem:[#allocation17_spill]] %s3081_s14 }
   0x4   :  { %3094 = sst [smem:[#allocation18_spill]] %s3082_s15 }
   0x5   :  { %3095 = sst [smem:[#allocation19_spill]] %s3083_s16 }
   0x6   :  { %21 = vsyncpa [#allocation3], 0 }
   0x7   :  { %22 = vsyncpa [#allocation5], 0 }
   0x8   :  { %24 = vsyncpa [#allocation5 + $0x1], 0 }
   0x9   :  { %25 = vsyncpa [#allocation8], 0  ;;  %s2619_s21 = smov 0   ;;  %s2621_s22 = smov 0  }
   0xa   :  { %s2623_s23 = smov 0   ;;  %s2625_s24 = smov 0  }
   0xb LB: > { %3096 = sst [smem:[#allocation12_spill]] %s2512_s23  ;;  %s2640_s25 = sadd.s32 1, %s2516_s24   ;;  %s2516_s24 = sphi %s2625_s24, %s3123_s24   ;;  %s2512_s23 = sphi %s2623_s23, %s3125_s23   ;;  %s2508_s22 = sphi %s2621_s22, %s3127_s22   ;;  %s2504_s21 = sphi %s2619_s21, %s3126_s21  }
   0xc   : > { %3097 = sst [smem:[#allocation13_spill]] %s2640_s25  ;;  %s59_s26 = sadd.s32 1, %s2512_s23 }
   0xd   : > { %s56_s27 = ssub.s32 %s2516_s24, %s2640_s25  ;;  %p66_p0 = scmp.ne.s32.totalorder %s2512_s23, %s2508_s22 }
   0xe   : > { %p57_p1 = scmp.eq.s32.totalorder %s56_s27, 0  ;;  %p67_p2 = scmp.eq.s32.totalorder %s2516_s24, 0 }
   0xf   : > { %p2269_p3 = scmp.lt.s32.totalorder %s2516_s24, 2  ;;  %s499_s29 = sand.u32 1, %s2516_s24  }
  0x10   : > { %s2650_s28 = scalar_select %p57_p1, %s2512_s23, %s59_s26  }
  0x11   : > { %p68_p4 = por %p67_p2, %p66_p0  ;;  %s3086_s30 = sand.u32 1, %s2512_s23  }
  0x12   : > { %3098 = sst [smem:[#allocation14_spill]] %s2650_s28  ;;  %s2123_s0 = sshll.u32 %s3086_s30, 3 }
  0x13   : > { %s2165_s17 = sshll.u32 %s2516_s24, 7  ;;  %s3099_s1 = sld [smem:[#allocation16_spill]] }
  0x14   : > { %s503_s25 = scalar_lea.vmem [#allocation4], %s2123_s0  ;;  %p2662_p5 = pnand %p2269_p3, %p68_p4 }
  0x15   : > { %s510_s27 = sshll.u32 %s503_s25, 4  ;;  %s2668_s26 = scalar_lea.sflag [#allocation5], %s499_s29  ;;  %s2666_s27 = int_to_ptr.vmem [resolvable:$true] %s510_s27 }
  0x16   : > { %p2368_p7 = pneg %p2662_p5 }
  0x19   : > { %s2660_s20 = scalar_lea.hbm %s3099_s1, %s2165_s17  ;;  %s2371_s17 = scalar_lea.hbm %s3099_s1, 256 }
  0x1a   : > { %s2366_s30 = scalar_lea.hbm %s2660_s20, 128  ;;  %p2372_p10 = scmp.lt.s32.totalorder %s2660_s20, %s3099_s1 }
  0x1b   : > { %p2367_p6 = scmp.ne.s32.totalorder %s2660_s20, %s2366_s30  ;;  %p2373_p11 = scmp.lt.s32.totalorder %s2371_s17, %s2366_s30 }
  0x1d   : > { %p2369_p8 = pnand %p2368_p7, %p2367_p6  ;;  %p2374_p12 = por %p2373_p11, %p2372_p10 }
  0x1f   : > { %p2370_p9 = pneg %p2369_p8 }
  0x21   : > { %p2375_p13 = pnand %p2374_p12, %p2370_p9 }
  0x23   : > { %2378 = shalt.err (!%p2375_p13)
}
  0x24   : > { %s2379_s29 = scalar_lea.vmem %s2666_s27, 128  ;;  %s2518_s0 = smov [#allocation4]  }
  0x25   : > { %p2380_p0 = scmp.ne.s32.totalorder %s2666_s27, %s2379_s29  ;;  %s2384_s25 = sshll.u32 %s2518_s0, 4  ;;  %s2385_s25 = int_to_ptr.vmem [resolvable:$false] %s2384_s25 }
  0x26   : > { %s2386_s28 = scalar_lea.vmem %s2385_s25, 256  ;;  %p2387_p3 = scmp.lt.s32.totalorder %s2666_s27, %s2385_s25 }
  0x27   : > { %p2382_p1 = pnand %p2380_p0, %p2368_p7  ;;  %p2388_p4 = scmp.lt.s32.totalorder %s2386_s28, %s2379_s29 }
  0x29   : > { %p2383_p2 = pneg %p2382_p1  ;;  %p2389_p6 = por %p2388_p4, %p2387_p3 }
  0x2b   : > { %p2390_p8 = pnand %p2389_p6, %p2383_p2 }
  0x2d   : > { %2393 = shalt.err (!%p2390_p8)
}
  0x2e   : > { %s2519_s30 = smov 64   ;;  %s2520_s17 = smov 4  }
  0x2f   : > { %2263 = dma.hbm_to_vmem [thread:$0]  (!%p2662_p5), %s2660_s20, 128, %s2666_s27, %s2668_s26, %s2519_s30, %s2519_s30, %s2520_s17  }
  0x30   : > { %s3101_s18 = sand.u32 1, %s2512_s23   ;;  %s2700_s0 = sadd.s32 4294967295, %s2516_s24  }
  0x31   : > { %s2126_s19 = sshll.u32 %s3101_s18, 4  ;;  %p72_p9 = scmp.ne.s32.totalorder %s2508_s22, %s2504_s21 }
  0x32   : > { %s542_s28 = scalar_lea.vmem [#allocation6], %s2126_s19  ;;  %p3088_p10 = scmp.eq.s32.totalorder %s2700_s0, 0 }
  0x33   : > { %s2697_s29 = sshll.u32 %s542_s28, 4  ;;  %p2119_p11 = scmp.ge.s32.totalorder %s2516_s24, 1  ;;  %s550_s29 = int_to_ptr.vmem [resolvable:$true] %s2697_s29 }
  0x34   : > { %p448_p12 = scmp.lt.s32.totalorder %s2516_s24, 3  ;;  %p2709_p13 = por %p3088_p10, %p72_p9 }
  0x35   : > { %s2521_s27 = smov [#allocation2]   ;;  %s2522_s17 = smov [#allocation7]  }
  0x36   : > { %s3102_s25 = scalar_select %p2709_p13, 1, 0 }
  0x37   : > { %p2713_p0 = pnand %p2119_p11, %p448_p12  ;;  %s460_s30 = sshll.u32 %s2521_s27, 4  ;;  %s461_s30 = int_to_ptr.vmem [resolvable:$true] %s460_s30 }
  0x38   : > { %s476_s18 = sshll.u32 %s2522_s17, 4  ;;  %s2166_s19 = sshll.u32 %s2516_s24, 8  ;;  %s477_s18 = int_to_ptr.vmem [resolvable:$true] %s476_s18 }
  0x39   : > { %s3103_s20 = scalar_select %p2713_p0, 1, 0 }
  0x3a   : > { %p2253_p1 = pneg %p2713_p0  ;;  %s2729_s23 = scalar_lea.hbm %s3073_s6, %s2166_s19 }
  0x3b   : > { %s2405_s27 = scalar_lea.vmem %s461_s30, 256  ;;  %p2413_p9 = scmp.lt.s32.totalorder %s461_s30, %s461_s30 }
  0x3c   : > { %p2721_p2 = pnand %p2253_p1, %p3088_p10  ;;  %p2406_p4 = scmp.ne.s32.totalorder %s461_s30, %s2405_s27 }
  0x3d   : > { %p2414_p11 = scmp.lt.s32.totalorder %s2405_s27, %s2405_s27 }
  0x3e   : > { %p2396_p3 = pneg %p2721_p2 }
  0x3f   : > { %p2415_p12 = por %p2414_p11, %p2413_p9 }
  0x40   : > { %p2408_p6 = pnand %p2406_p4, %p2396_p3 }
  0x42   : > { %p2409_p8 = pneg %p2408_p6 }
  0x44   : > { %p2416_p1 = pnand %p2415_p12, %p2409_p8 }
  0x46   : > { %2419 = shalt.err (!%p2416_p1)
}
  0x47   : > { %s2523_s17 = smov 128   ;;  %s2524_s24 = smov 8  }
  0x48   : > { %s3105_s28 = sld [smem:[#allocation15_spill]]  ;;  %s2431_s15 = scalar_lea.vmem %s477_s18, 512 }
  0x49   : > { %p2432_p4 = scmp.ne.s32.totalorder %s477_s18, %s2431_s15  ;;  %p2439_p8 = scmp.lt.s32.totalorder %s477_s18, %s477_s18 }
  0x4a   : > { %p2440_p11 = scmp.lt.s32.totalorder %s2431_s15, %s2431_s15 }
  0x4b   : > { %p2434_p6 = pnand %p2432_p4, %p2396_p3 }
  0x4c   : > { %p2441_p12 = por %p2440_p11, %p2439_p8 }
  0x4d   : > { %p2435_p9 = pneg %p2434_p6 }
  0x4e   : > { %2256 = dma.hbm_to_vmem [thread:$0]  (!%p2721_p2), %s3105_s28, 256, %s461_s30, [#allocation3], %s2523_s17, %s2523_s17, %s2524_s24  }
  0x4f   : > { %p2442_p1 = pnand %p2441_p12, %p2435_p9 }
  0x51   : > { %2445 = shalt.err (!%p2442_p1)
}
  0x52   : > { %2259 = dma.hbm_to_vmem [thread:$0]  (!%p2721_p2), %s3077_s10, 512, %s477_s18, [#allocation8], %s2523_s17, %s2523_s17, %s2524_s24  }
  0x53   : > { %s2446_s30 = scalar_lea.hbm %s2729_s23, 256  ;;  %s2451_s1 = scalar_lea.hbm %s3073_s6, 512 }
  0x54   : > { %p2447_p3 = scmp.ne.s32.totalorder %s2729_s23, %s2446_s30  ;;  %p2452_p9 = scmp.lt.s32.totalorder %s2729_s23, %s3073_s6 }
  0x55   : > { %p2453_p8 = scmp.lt.s32.totalorder %s2451_s1, %s2446_s30 }
  0x56   : > { %p2449_p4 = pnand %p2447_p3, %p2368_p7 }
  0x57   : > { %p2454_p11 = por %p2453_p8, %p2452_p9 }
  0x58   : > { %p2450_p6 = pneg %p2449_p4 }
  0x5a   : > { %p2455_p12 = pnand %p2454_p11, %p2450_p6 }
  0x5c   : > { %2458 = shalt.err (!%p2455_p12)
}
  0x5d   : > { %s2459_s14 = scalar_lea.vmem %s550_s29, 256  ;;  %s2525_s18 = smov [#allocation6]  }
  0x5e   : > { %p2460_p2 = scmp.ne.s32.totalorder %s550_s29, %s2459_s14  ;;  %s2464_s27 = sshll.u32 %s2525_s18, 4  ;;  %s2465_s27 = int_to_ptr.vmem [resolvable:$false] %s2464_s27 }
  0x5f   : > { %s2466_s15 = scalar_lea.vmem %s2465_s27, 512  ;;  %p2467_p4 = scmp.lt.s32.totalorder %s550_s29, %s2465_s27 }
  0x60   : > { %p2462_p1 = pnand %p2460_p2, %p2368_p7  ;;  %p2468_p10 = scmp.lt.s32.totalorder %s2466_s15, %s2459_s14 }
  0x62   : > { %p2463_p3 = pneg %p2462_p1  ;;  %p2469_p13 = por %p2468_p10, %p2467_p4 }
  0x64   : > { %p2470_p0 = pnand %p2469_p13, %p2463_p3 }
  0x66   : > { %2473 = shalt.err (!%p2470_p0)
}
  0x67   : > { %2266 = dma.hbm_to_vmem [thread:$0]  (!%p2662_p5), %s2729_s23, 256, %s550_s29, %s2668_s26, %s2523_s17, %s2523_s17, %s2524_s24  }
  0x68   : > { %p3106_p7 = scmp.ne.s32.totalorder %s3103_s20, 0 }
  0x69   : > { %p3107_p6 = scmp.eq.s32.totalorder (!%p3106_p7), %s2700_s0, 0 }
  0x6a   : > { %591 = sbr.rel (%p3106_p7) target bundleno = 1330 (0x532), region = 84 }
  0x6f   : > { %2491 = dma.done.wait (%p3107_p6), [#allocation3], 256   ;;  %p3108_p9 = pmov %p3107_p6 }
  0x70   : > { %s597_s30 = sand.u32 1, %s2700_s0   ;;  %s599_s16 = sand.u32 1, %s2508_s22  }
  0x71   : > { %2493 = vsyncadd (%p3108_p9), [#allocation3], 4294967040  ;;  %s2131_s21 = sshll.u32 %s599_s16, 3  ;;  %s598_s1 = scalar_lea.sflag [#allocation5], %s597_s30 }
  0x72   : > { %s601_s19 = scalar_lea.vmem [#allocation4], %s2131_s21  ;;  %p3109_p10 = scmp.ne.s32.totalorder %s3102_s25, 0 }
  0x74   : > { %2495 = dma.done.wait (%p3109_p10), %s598_s1, 384  }
  0x75   : > { %2497 = vsyncadd (%p3109_p10), %s598_s1, 4294966912  ;;  %s2790_s23 = sshll.u32 %s599_s16, 4  ;;  %p3110_p5 = pmov %p3107_p6 }
  0x76   : > { %s610_s26 = scalar_lea.vmem [#allocation6], %s2790_s23 }
  0x77   : > { %2499 = dma.done.wait (%p3110_p5), [#allocation8], 512   ;;  %p3111_p13 = pmov %p3110_p5 }
  0x78   : > { %v2526_v0 = vmov 0.0   ;;  %vm2527_vm0 = vmmov 0   ;;  %vm727_vm1 = vcmask 64512   ;;  %v719_v1 = vld [vmem:[#allocation2] sm:$0xff]  ;;  %v720_v2 = vld [vmem:[#allocation2 + $0x8] sm:$0xff]  ;;  %vm882_vm2 = vcmask 60416  }
  0x79   : > { %2501 = vsyncadd (%p3111_p13), [#allocation8], 4294966784  ;;  %2187 = vmatprep.subr.mxu0 %v2526_v0  ;;  %2192 = vmatprep.subr.mxu1 %v2526_v0  ;;  %v721_v3 = vld [vmem:[%s601_s19] sm:$0xf]  ;;  %v722_v4 = vld [vmem:[%s601_s19 + $0x4] sm:$0xf]  ;;  %v889_v5 = vmul.f32 %v719_v1, %v719_v1  ;;  %v890_v7 = vmul.f32 %v720_v2, %v720_v2  ;;  %v899_v13 = vlaneseq }
  0x7a   : > { %2189 = vmatprep.mubr.msk.f32.mxu0 %vm2527_vm0, %v2526_v0  ;;  %2194 = vmatprep.mubr.msk.f32.mxu1 %vm2527_vm0, %v2526_v0  ;;  %v880_v6 = vmul.f32 %v721_v3, %v721_v3  ;;  %v881_v8 = vmul.f32 %v722_v4, %v722_v4  ;;  %v1425_v37 = vld [vmem:[%s610_s26 + $0x8] sm:$0xff]  ;;  %p691_p0 = scmp.lt.s32.totalorder %s2700_s0, 1  ;;  %s3120_s16 = sld [smem:[#allocation17_spill]] }
  0x7b   : > { %2188 = vmatpush3.xpose.msk.msra.mxu0 %vm727_vm1, %v719_v1  ;;  %2193 = vmatpush3.xpose.msk.msra.mxu1 %vm727_vm1, %v720_v2  ;;  %v891_v9 = vsel %vm727_vm1, %v889_v5, 0.0  ;;  %v894_v11 = vsel %vm727_vm1, %v890_v7, 0.0  ;;  %v900_v15 = vand.u32 127, %v899_v13  ;;  %v902_v16 = vshrl.u32 %v899_v13, 7  ;;  %v723_v5 = vld [vmem:[%s3069_s2] sm:$0x3] }
  0x7c   : > { %2197 = vmatprep.subr.mxu0 %v2526_v0  ;;  %2204 = vmatprep.subr.mxu1 %v2526_v0  ;;  %v883_v10 = vsel %vm882_vm2, %v880_v6, 0.0  ;;  %v886_v12 = vsel %vm882_vm2, %v881_v8, 0.0  ;;  %s3129_s0 = smov (!%p691_p0, %s2700_s0), 1  ;;  %s3121_s23 = sld [smem:[#allocation18_spill]] }
  0x7d   : > { %892 = vadd.xlane.f32.xlu0 %v891_v9  ;;  %884 = vadd.xlane.f32.xlu1 %v883_v10  ;;  %v903_v18 = vsub.s32 %v900_v15, %v902_v16  ;;  %v2829_v42 = vsub.s32 1, %v902_v16  ;;  %v2831_v43 = vsub.s32 0, %v902_v16  ;;  %v2833_v50 = vsub.s32 2, %v902_v16  ;;  %s693_s24 = scalar_lea.vmem %s3070_s3, %s3129_s0  ;;  %s696_s18 = scalar_lea.vmem %s3071_s4, %s3129_s0 }
  0x7e   : > { %2190 = vmatmul.mubr.msk.f32.vlgmr.msra.gmra.mxu0 %vm727_vm1, %v721_v3  ;;  %2195 = vmatmul.mubr.msk.f32.vlgmr.msra.gmra.mxu1 %vm727_vm1, %v722_v4  ;;  %v2846_v58 = vsub.s32 3, %v902_v16  ;;  %s699_s30 = scalar_lea.vmem %s3072_s5, %s3129_s0  ;;  %s702_s1 = scalar_lea.vmem %s3074_s7, %s3129_s0 }
  0x7f   : > { %2201 = vmatprep.mubr.msk.f32.mxu0 %vm2527_vm0, %v2526_v0  ;;  %2208 = vmatprep.mubr.msk.f32.mxu1 %vm2527_vm0, %v2526_v0  ;;  %s708_s20 = scalar_lea.vmem %s3076_s9, %s3129_s0  ;;  %s2134_s29 = sshll.u32 %s3129_s0, 1 }
  0x80   : > { %2198 = vmatpush3.msra.mxu0 %v1425_v37  ;;  %2205 = vmatpush3.msra.mxu1 %v1425_v37  ;;  %s711_s21 = scalar_lea.vmem %s3120_s16, %s3129_s0  ;;  %s3122_s17 = sld [smem:[#allocation19_spill]] }
  0x81   : > { %895 = vadd.xlane.f32.xlu0 %v894_v11  ;;  %887 = vadd.xlane.f32.xlu1 %v886_v12  ;;  %v1165_v11 = vrot.slane %v723_v5, %v2831_v43 }
  0x82   : > { %2199 = vmatprep.subr.mxu0 %v2526_v0  ;;  %2206 = vmatprep.subr.mxu1 %v2526_v0 }
 0x106   : > { %v893_v14 = vpop.xlane.xlu0 %892  ;;  %v885_v17 = vpop.xlane.xlu1 %884 }
 0x107   : > { %v904_v20 = vrot.slane %v893_v14, %v903_v18 }
 0x109   : > { %v918_v23 = vadd.f32 %v904_v20, %v885_v17 }
 0x10a   : > { %v896_v19 = vpop.xlane.xlu0 %895  ;;  %v888_v22 = vpop.xlane.xlu1 %887 }
 0x10b   : > { %v908_v21 = vrot.slane %v896_v19, %v903_v18 }
 0x10d   : > { %v919_v24 = vadd.f32 %v908_v21, %v888_v22  ;;  %v1172_v21 = vrot.slane %v723_v5, %v2829_v42 }
 0x13e   : > { %v800_v25 = vpop.f32.mrf.mxu0  ;;  %v876_v26 = vpop.f32.mrf.mxu1 }
 0x13f   : > { %v920_v27 = vmul.f32 2.0, %v800_v25  ;;  %v921_v28 = vmul.f32 2.0, %v876_v26 }
 0x140   : > { %v2191_v29 = vpop.f32.mrf.mxu0  ;;  %v2196_v30 = vpop.f32.mrf.mxu1 }
 0x141   : > { %v922_v31 = vsub.f32 %v918_v23, %v920_v27  ;;  %v923_v32 = vsub.f32 %v919_v24, %v921_v28  ;;  %v2528_v27 = vmov 683565275   ;;  %v2529_v29 = vmov 2475754826  }
 0x143   : > { %v924_v33 = vmax.f32 %v922_v31, 0.0  ;;  %v925_v34 = vmax.f32 %v923_v32, 0.0  ;;  %v2530_v31 = vmov 2131351028  }
 0x145   : > { %vm926_vm3 = vcmp.gt.f32.partialorder %v924_v33, 1e-12  ;;  %vm928_vm4 = vcmp.lt.f32.partialorder %v924_v33, 25.0  ;;  %vm927_vm5 = vcmp.gt.f32.partialorder %v925_v34, 1e-12  ;;  %vm929_vm6 = vcmp.lt.f32.partialorder %v925_v34, 25.0 }
 0x146   : > { %vm2817_vm7 = vmand %vm926_vm3, %vm928_vm4 }
 0x147   : > { %v932_v36 = vsel %vm2817_vm7, %v924_v33, 1.0  ;;  %vm2823_vm8 = vmand %vm927_vm5, %vm929_vm6 }
 0x148   : > { %2318 = vrsqrt.f32 %v932_v36  ;;  %v933_v38 = vsel %vm2823_vm8, %v925_v34, 1.0  ;;  %vm936_vm9 = vcmp.eq.f32.partialorder %v932_v36, inf  ;;  %v939_v44 = vand.u32 2147483648, %v932_v36 }
 0x149   : > { %2320 = vrsqrt.f32 %v933_v38  ;;  %vm938_vm10 = vcmp.eq.f32.partialorder %v932_v36, 0.0  ;;  %vm943_vm11 = vcmp.eq.f32.partialorder %v933_v38, inf  ;;  %v946_v47 = vand.u32 2147483648, %v933_v38 }
 0x14a   : > { %vm945_vm12 = vcmp.eq.f32.partialorder %v933_v38, 0.0 }
 0x155   : > { %v2319_v39 = vpop.eup %2318 }
 0x156   : > { %v2321_v40 = vpop.eup %2320  ;;  %v935_v41 = vmul.f32 %v2319_v39, %v932_v36 }
 0x157   : > { %v942_v45 = vmul.f32 %v2321_v40, %v933_v38  ;;  %v2532_v40 = vmov 920167782  }
 0x158   : > { %v937_v46 = vsel %vm936_vm9, %v932_v36, %v935_v41  ;;  %v2531_v36 = vmov 2102212464  }
 0x159   : > { %v940_v48 = vsel %vm938_vm10, %v939_v44, %v937_v46  ;;  %v944_v49 = vsel %vm943_vm11, %v933_v38, %v942_v45  ;;  %v2533_v45 = vmov 1326507024  }
 0x15a   : > { %v1196_v51 = vrot.slane %v940_v48, %v2829_v42  ;;  %v2836_v52 = vmul.f32 0.62831855, %v940_v48  ;;  %v1189_v53 = vrot.slane %v940_v48, %v2831_v43  ;;  %v2839_v54 = vsel %vm945_vm12, %v946_v47, %v944_v49 }
 0x15b   : > { %v2842_v55 = vmul.f32 0.62831855, %v2839_v54  ;;  %v1217_v61 = vrot.slane %v2839_v54, %v2831_v43  ;;  %v1203_v62 = vrot.slane %v940_v48, %v2833_v50  ;;  %v1224_v8 = vrot.slane %v2839_v54, %v2829_v42 }
 0x15c   : > { %1198 = vbcast.lane.b32.xlu1 %v1196_v51, 256  ;;  %v953_v56 = vand.u32 2139095040, %v2836_v52  ;;  %1191 = vbcast.lane.b32.xlu0 %v1189_v53, 256  ;;  %v950_v59 = vand.u32 2147483647, %v2836_v52  ;;  %v1210_v9 = vrot.slane %v940_v48, %v2846_v58  ;;  %v1231_v17 = vrot.slane %v2839_v54, %v2833_v50 }
 0x15d   : > { %v1056_v57 = vand.u32 2139095040, %v2842_v55  ;;  %v1053_v63 = vand.u32 2147483647, %v2842_v55  ;;  %v1238_v20 = vrot.slane %v2839_v54, %v2846_v58 }
 0x15e   : > { %v954_v60 = vshrl.u32 %v953_v56, 23  ;;  %v957_v3 = vand.u32 8388607, %v950_v59 }
 0x15f   : > { %v1057_v1 = vshrl.u32 %v1056_v57, 23  ;;  %v1060_v6 = vand.u32 8388607, %v1053_v63 }
 0x160   : > { %v2139_v2 = vadd.s32 4294967169, %v954_v60  ;;  %1219 = vbcast.lane.b32.xlu1 %v1217_v61, 256  ;;  %1205 = vbcast.lane.b32.xlu0 %v1203_v62, 256  ;;  %v958_v12 = vor.u32 8388608, %v957_v3 }
 0x161   : > { %v2143_v4 = vadd.s32 4294967169, %v1057_v1  ;;  %v1061_v13 = vor.u32 8388608, %v1060_v6 }
 0x162   : > { %v960_v7 = vadd.s32 1, %v2139_v2  ;;  %v2873_v24 = vshll.u32 %v958_v12, 8 }
 0x163   : > { %v1063_v10 = vadd.s32 1, %v2143_v4  ;;  %v2875_v25 = vshll.u32 %v1061_v13, 8 }
 0x164   : > { %vm961_vm13 = vcmp.gt.s32.totalorder %v960_v7, 0  ;;  %1226 = vbcast.lane.b32.xlu1 %v1224_v8, 256  ;;  %1212 = vbcast.lane.b32.xlu0 %v1210_v9, 256 }
 0x165   : > { %v962_v14 = vsel %vm961_vm13, %v960_v7, 0  ;;  %vm1064_vm14 = vcmp.gt.s32.totalorder %v1063_v10, 0 }
 0x166   : > { %v964_v15 = vand.u32 31, %v962_v14  ;;  %v1065_v16 = vsel %vm1064_vm14, %v1063_v10, 0  ;;  %v963_v18 = vshrl.u32 %v962_v14, 5  ;;  %vm952_vm14 = vcmp.lt.s32.totalorder %v2836_v52, 0 }
 0x167   : > { %v2866_v19 = vand.u32 31, %v1065_v16  ;;  %v2871_v23 = vshrl.u32 %v1065_v16, 5 }
 0x168   : > { %v965_v22 = vsub.s32 32, %v964_v15  ;;  %1233 = vbcast.lane.b32.xlu1 %v1231_v17, 256  ;;  %1167 = vbcast.lane.b32.xlu0 %v1165_v11, 256  ;;  %v967_v28 = vshll.u32 %v2528_v27, %v964_v15  ;;  %v970_v30 = vshll.u32 %v2529_v29, %v964_v15  ;;  %v973_v32 = vshll.u32 %v2530_v31, %v964_v15 }
 0x169   : > { %v1068_v26 = vsub.s32 32, %v2866_v19  ;;  %v976_v39 = vshll.u32 %v2531_v36, %v964_v15  ;;  %v979_v44 = vshll.u32 %v2532_v40, %v964_v15  ;;  %vm982_vm15 = vcmp.lt.s32.totalorder %v963_v18, 1 }
 0x16a   : > { %v968_v33 = vshrl.u32 %v2529_v29, %v965_v22  ;;  %v971_v34 = vshrl.u32 %v2530_v31, %v965_v22  ;;  %v974_v38 = vshrl.u32 %v2531_v36, %v965_v22  ;;  %v977_v41 = vshrl.u32 %v2532_v40, %v965_v22 }
 0x16b   : > { %v980_v46 = vshrl.u32 %v2533_v45, %v965_v22  ;;  %v966_v47 = vshrl.u32 %v2528_v27, %v965_v22  ;;  %vm984_vm1 = vcmp.lt.s32.totalorder %v963_v18, 3  ;;  %vm985_vm2 = vcmp.lt.s32.totalorder %v963_v18, 4 }
 0x16c   : > { %1240 = vbcast.lane.b32.xlu1 %v1238_v20, 256  ;;  %v969_v48 = vor.u32 %v968_v33, %v967_v28  ;;  %v972_v49 = vor.u32 %v971_v34, %v970_v30  ;;  %v975_v51 = vor.u32 %v974_v38, %v973_v32  ;;  %v978_v53 = vor.u32 %v977_v41, %v976_v39 }
 0x16d   : > { %v981_v54 = vor.u32 %v980_v46, %v979_v44  ;;  %v1071_v3 = vshrl.u32 %v2529_v29, %v1068_v26  ;;  %vm983_vm3 = vcmp.lt.s32.totalorder %v963_v18, 2  ;;  %v1070_v6 = vshll.u32 %v2528_v27, %v2866_v19 }
 0x16e   : > { %v986_v56 = vsel %vm982_vm15, %v966_v47, %v969_v48  ;;  %v987_v57 = vsel %vm985_vm2, %v975_v51, 2102212464  ;;  %v990_v60 = vsel %vm982_vm15, %v969_v48, %v972_v49  ;;  %v994_v61 = vsel %vm982_vm15, %v972_v49, %v975_v51 }
 0x16f   : > { %v988_v62 = vsel %vm984_vm1, %v972_v49, %v987_v57  ;;  %v991_v1 = vsel %vm985_vm2, %v978_v53, 920167782  ;;  %v995_v2 = vsel %vm985_vm2, %v981_v54, 1326507024  ;;  %v1073_v10 = vshll.u32 %v2529_v29, %v2866_v19 }
 0x170   : > { %1174 = vbcast.lane.b32.xlu1 %v1172_v21, 256  ;;  %v992_v4 = vsel %vm984_vm1, %v975_v51, %v991_v1  ;;  %v996_v5 = vsel %vm984_vm1, %v978_v53, %v995_v2  ;;  %v989_v7 = vsel %vm983_vm3, %v986_v56, %v988_v62  ;;  %v1072_v15 = vor.u32 %v1071_v3, %v1070_v6 }
 0x171   : > { %v993_v8 = vsel %vm983_vm3, %v990_v60, %v992_v4  ;;  %v997_v9 = vsel %vm983_vm3, %v994_v61, %v996_v5  ;;  %v1074_v16 = vshrl.u32 %v2530_v31, %v1068_v26  ;;  %v1076_v17 = vshll.u32 %v2530_v31, %v2866_v19 }
 0x172   : > { %v2881_v11 = vmul.u32.u64.low %v2873_v24, %v997_v9  ;;  %v2882_v12 = vmul.u32.u64.high %v2873_v24, %v997_v9, %v2881_v11  ;;  %v2885_v13 = vmul.u32.u64.low %v2873_v24, %v993_v8  ;;  %v2886_v14 = vmul.u32.u64.high %v2873_v24, %v993_v8, %v2885_v13 }
 0x173   : > { %v1077_v18 = vshrl.u32 %v2531_v36, %v1068_v26  ;;  %v1069_v20 = vshrl.u32 %v2528_v27, %v1068_v26  ;;  %v1079_v21 = vshll.u32 %v2531_v36, %v2866_v19  ;;  %v1080_v22 = vshrl.u32 %v2532_v40, %v1068_v26 }
 0x174   : > { %v1083_v28 = vshrl.u32 %v2533_v45, %v1068_v26  ;;  %v1005_v29 = vmul.u32 %v2873_v24, %v989_v7  ;;  %v1075_v30 = vor.u32 %v1074_v16, %v1073_v10  ;;  %v1082_v33 = vshll.u32 %v2532_v40, %v2866_v19 }
 0x175   : > { %v1078_v32 = vor.u32 %v1077_v18, %v1076_v17  ;;  %vm1007_vm4 = vc.u32 %v2882_v12, %v2885_v13  ;;  %v1008_v34 = vadd.s32 1, %v2886_v14  ;;  %v1081_v38 = vor.u32 %v1080_v22, %v1079_v21 }
 0x176   : > { %vm1085_vm5 = vcmp.lt.s32.totalorder %v2871_v23, 1  ;;  %v1084_v31 = vor.u32 %v1083_v28, %v1082_v33  ;;  %vm1087_vm6 = vcmp.lt.s32.totalorder %v2871_v23, 3  ;;  %vm1088_vm9 = vcmp.lt.s32.totalorder %v2871_v23, 4 }
 0x177   : > { %v1093_v27 = vsel %vm1085_vm5, %v1072_v15, %v1075_v30  ;;  %v1009_v26 = vsel %vm1007_vm4, %v1008_v34, %v2886_v14  ;;  %v1090_v24 = vsel %vm1088_vm9, %v1078_v32, 2102212464  ;;  %v1094_v36 = vsel %vm1088_vm9, %v1081_v38, 920167782 }
 0x178   : > { %v1097_v39 = vsel %vm1085_vm5, %v1075_v30, %v1078_v32  ;;  %v1010_v41 = vadd.s32 %v1009_v26, %v1005_v29  ;;  %vm1086_vm10 = vcmp.lt.s32.totalorder %v2871_v23, 2  ;;  %v1095_v19 = vsel %vm1087_vm6, %v1078_v32, %v1094_v36 }
 0x179   : > { %v1098_v40 = vsel %vm1088_vm9, %v1084_v31, 1326507024  ;;  %v1089_v44 = vsel %vm1085_vm5, %v1069_v20, %v1072_v15  ;;  %v1091_v45 = vsel %vm1087_vm6, %v1075_v30, %v1090_v24  ;;  %v1096_v46 = vsel %vm1086_vm10, %v1093_v27, %v1095_v19 }
 0x17a   : > { %v1099_v47 = vsel %vm1087_vm6, %v1081_v38, %v1098_v40  ;;  %v1011_v48 = vadd.s32 536870912, %v1010_v41  ;;  %v2900_v51 = vmul.u32.u64.low %v2875_v25, %v1096_v46  ;;  %v2901_v53 = vmul.u32.u64.high %v2875_v25, %v1096_v46, %v2900_v51 }
 0x17b   : > { %v1100_v49 = vsel %vm1086_vm10, %v1097_v39, %v1099_v47  ;;  %v1092_v60 = vsel %vm1086_vm10, %v1089_v44, %v1091_v45  ;;  %v1006_v16 = vadd.s32 %v2885_v13, %v2882_v12  ;;  %vm2916_vm15 = vcmp.le.f32.partialorder %v950_v59, 0.7853982 }
 0x17c   : > { %v2904_v54 = vmul.u32.u64.low %v2875_v25, %v1100_v49  ;;  %v2905_v56 = vmul.u32.u64.high %v2875_v25, %v1100_v49, %v2904_v54  ;;  %v1012_v57 = vshrl.u32 %v1011_v48, 30  ;;  %v1111_v23 = vadd.s32 1, %v2901_v53 }
 0x17d   : > { %v1108_v62 = vmul.u32 %v2875_v25, %v1092_v60  ;;  %vm1055_vm1 = vcmp.lt.s32.totalorder %v2842_v55, 0  ;;  %vm2926_vm2 = vcmp.le.f32.partialorder %v1053_v63, 0.7853982  ;;  %vm1042_vm6 = vweird.f32 %v2836_v52 }
 0x17e   : > { %v1013_v61 = vshll.u32 %v1012_v57, 30  ;;  %vm1110_vm11 = vc.u32 %v2905_v56, %v2900_v51  ;;  %v1109_v27 = vadd.s32 %v2900_v51, %v2905_v56  ;;  %v1036_v48 = vsub.s32 4, %v1012_v57 }
 0x17f   : > { %v1112_v2 = vsel %vm1110_vm11, %v1111_v23, %v2901_v53 }
 0x180   : > { %v1014_v1 = vsub.s32 %v1010_v41, %v1013_v61  ;;  %v1113_v3 = vadd.s32 %v1112_v2, %v1108_v62  ;;  %v1037_v54 = vsel %vm952_vm14, %v1036_v48, %v1012_v57 }
 0x181   : > { %v1039_v61 = vsel %vm2916_vm15, 0, %v1037_v54 }
 0x182   : > { %v1016_v4 = vsub.s32 0, %v1014_v1  ;;  %v1114_v5 = vadd.s32 536870912, %v1113_v3  ;;  %v1043_v57 = vand.u32 3, %v1039_v61 }
 0x184   : > { %v2140_v6 = vmin.u32 %v1016_v4, %v1014_v1  ;;  %v1115_v7 = vshrl.u32 %v1114_v5, 30  ;;  %vm1048_vm3 = vcmp.eq.s32.totalorder %v1043_v57, 2  ;;  %vm1045_vm4 = vcmp.eq.s32.totalorder %v1043_v57, 0 }
 0x185   : > { %vm1044_vm5 = vcmp.lt.s32.totalorder %v1043_v57, 2 }
 0x186   : > { %v1018_v8 = vclz %v2140_v6  ;;  %v1116_v9 = vshll.u32 %v1115_v7, 30  ;;  %v1139_v62 = vsub.s32 4, %v1115_v7 }
 0x188   : > { %v2141_v10 = vadd.s32 4294967294, %v1018_v8  ;;  %v1117_v11 = vsub.s32 %v1113_v3, %v1116_v9  ;;  %v1140_v4 = vsel %vm1055_vm1, %v1139_v62, %v1115_v7 }
 0x189   : > { %v1142_v8 = vsel %vm2926_vm2, 0, %v1140_v4 }
 0x18a   : > { %vm2142_vm12 = vcmp.lt.s32.totalorder %v2141_v10, 0  ;;  %v1119_v15 = vsub.s32 0, %v1117_v11 }
 0x18b   : > { %v1021_v14 = vsel %vm2142_vm12, 0, %v2141_v10  ;;  %vm1145_vm12 = vweird.f32 %v2842_v55 }
 0x18c   : > { %v1022_v25 = vsub.s32 32, %v1021_v14  ;;  %v1026_v17 = vsub.s32 4294967266, %v1021_v14  ;;  %v2144_v18 = vmin.u32 %v1119_v15, %v1117_v11  ;;  %v1023_v20 = vshll.u32 %v1014_v1, %v1021_v14 }
 0x18d   : > { %v1146_v14 = vand.u32 3, %v1142_v8 }
 0x18e   : > { %v1024_v21 = vshrl.u32 %v1006_v16, %v1022_v25  ;;  %v1027_v22 = vadd.s32 127, %v1026_v17  ;;  %v1121_v28 = vclz %v2144_v18 }
 0x18f   : > { %vm1151_vm9 = vcmp.eq.s32.totalorder %v1146_v14, 2  ;;  %vm1148_vm10 = vcmp.eq.s32.totalorder %v1146_v14, 0  ;;  %vm1147_vm11 = vcmp.lt.s32.totalorder %v1146_v14, 2 }
 0x190   : > { %v1025_v29 = vor.u32 %v1024_v21, %v1023_v20  ;;  %v1028_v30 = vshll.u32 %v1027_v22, 23  ;;  %v2145_v32 = vadd.s32 4294967294, %v1121_v28 }
 0x192   : > { %v1029_v33 = vor.u32 4788187, %v1028_v30  ;;  %vm2146_vm13 = vcmp.lt.s32.totalorder %v2145_v32, 0  ;;  %v1032_v38 = vcvt.s32.f32 %v1025_v29 }
 0x193   : > { %v1124_v31 = vsel %vm2146_vm13, 0, %v2145_v32 }
 0x194   : > { %v1030_v34 = vand.u32 2147483647, %v1029_v33  ;;  %v1125_v26 = vsub.s32 32, %v1124_v31  ;;  %v1129_v24 = vsub.s32 4294967266, %v1124_v31  ;;  %v1126_v13 = vshll.u32 %v1117_v11, %v1124_v31 }
 0x196   : > { %v1033_v12 = vmul.f32 %v1032_v38, %v1030_v34  ;;  %v1127_v36 = vshrl.u32 %v1109_v27, %v1125_v26  ;;  %v1130_v39 = vadd.s32 127, %v1129_v24  ;;  %v2150_v24 = vld [vmem:[%s696_s18] ss:$0 sm:$0xff] }
 0x198   : > { %v1034_v41 = vxor.u32 2147483648, %v1033_v12  ;;  %v1128_v19 = vor.u32 %v1127_v36, %v1126_v13  ;;  %v1131_v40 = vshll.u32 %v1130_v39, 23 }
 0x19a   : > { %v1035_v45 = vsel %vm952_vm14, %v1034_v41, %v1033_v12  ;;  %v1132_v47 = vor.u32 4788187, %v1131_v40  ;;  %v1135_v51 = vcvt.s32.f32 %v1128_v19  ;;  %vm909_vm14 = vcmask 1041409  }
 0x19b   : > { %v1038_v46 = vsel %vm2916_vm15, %v2836_v52, %v1035_v45  ;;  %vm910_vm15 = vcmask 1042434  }
 0x19c   : > { %2322 = vcosq.f32 %v1038_v46  ;;  %v1133_v49 = vand.u32 2147483647, %v1132_v47 }
 0x19d   : > { %2324 = vsinq.f32 %v1038_v46 }
 0x19e   : > { %v1136_v53 = vmul.f32 %v1135_v51, %v1133_v49 }
 0x1a0   : > { %v1137_v56 = vxor.u32 2147483648, %v1136_v53 }
 0x1a2   : > { %v1138_v60 = vsel %vm1055_vm1, %v1137_v56, %v1136_v53  ;;  %vm912_vm1 = vcmask 1043459  }
 0x1a3   : > { %v1141_v23 = vsel %vm2926_vm2, %v2842_v55, %v1138_v60  ;;  %vm1608_vm2 = vcmask 261120  }
 0x1a4   : > { %2326 = vcosq.f32 %v1141_v23 }
 0x1a5   : > { %2328 = vsinq.f32 %v1141_v23 }
 0x1a9   : > { %v2323_v1 = vpop.eup %2322 }
 0x1aa   : > { %v2325_v2 = vpop.eup %2324  ;;  %v1049_v3 = vxor.u32 2147483648, %v2323_v1 }
 0x1ab   : > { %v1046_v63 = vxor.u32 2147483648, %v2325_v2 }
 0x1ac   : > { %v1050_v5 = vsel %vm1048_vm3, %v1049_v3, %v2325_v2  ;;  %vm1918_vm3 = vcmask 3072  }
 0x1ad   : > { %v1047_v6 = vsel %vm1045_vm4, %v2323_v1, %v1046_v63  ;;  %vm1937_vm4 = vcmask 1024  }
 0x1ae   : > { %v1051_v9 = vsel %vm1044_vm5, %v1047_v6, %v1050_v5 }
 0x1af   : > { %v1052_v10 = vsel %vm1042_vm6, nan, %v1051_v9 }
 0x1b0   : > { %v1156_v11 = vadd.f32 1.0, %v1052_v10 }
 0x1b1   : > { %v2327_v15 = vpop.eup %2326 }
 0x1b2   : > { %v1158_v16 = vmul.f32 0.5, %v1156_v11  ;;  %v2329_v25 = vpop.eup %2328  ;;  %v1152_v17 = vxor.u32 2147483648, %v2327_v15 }
 0x1b3   : > { %v1149_v18 = vxor.u32 2147483648, %v2329_v25 }
 0x1b4   : > { %v1160_v7 = vsel %vm2817_vm7, %v1158_v16, 0.0  ;;  %v1153_v22 = vsel %vm1151_vm9, %v1152_v17, %v2329_v25  ;;  %v2147_v17 = vld [vmem:[%s699_s30] ss:$0 sm:$0xff] }
 0x1b5   : > { %v1305_v20 = vrot.slane %v1160_v7, %v2829_v42  ;;  %v1298_v21 = vrot.slane %v1160_v7, %v2831_v43  ;;  %v1150_v52 = vsel %vm1148_vm10, %v2327_v15, %v1149_v18  ;;  %v1312_v31 = vrot.slane %v1160_v7, %v2833_v50 }
 0x1b6   : > { %v1154_v28 = vsel %vm1147_vm11, %v1150_v52, %v1153_v22  ;;  %v1319_v27 = vrot.slane %v1160_v7, %v2846_v58 }
 0x1b7   : > { %1307 = vbcast.lane.b32.xlu1 %v1305_v20, 256  ;;  %1300 = vbcast.lane.b32.xlu0 %v1298_v21, 256  ;;  %v1155_v29 = vsel %vm1145_vm12, nan, %v1154_v28 }
 0x1b8   : > { %v1157_v30 = vadd.f32 1.0, %v1155_v29 }
 0x1ba   : > { %v1159_v35 = vmul.f32 0.5, %v1157_v30 }
 0x1bc   : > { %v1161_v32 = vsel %vm2823_vm8, %v1159_v35, 0.0  ;;  %vm1367_vm8 = vcmask 130048  }
 0x1bd   : > { %v1333_v33 = vrot.slane %v1161_v32, %v2829_v42  ;;  %v1326_v34 = vrot.slane %v1161_v32, %v2831_v43  ;;  %v1340_v38 = vrot.slane %v1161_v32, %v2833_v50  ;;  %v1347_v55 = vrot.slane %v1161_v32, %v2846_v58  ;;  %v1424_v42 = vld [vmem:[%s610_s26] sm:$0xff]  ;;  %s705_s26 = scalar_lea.vmem %s3075_s8, %s3129_s0 }
 0x1be   : > { %2200 = vmatpush3.msra.mxu0 %v1424_v42  ;;  %2207 = vmatpush3.msra.mxu1 %v1424_v42  ;;  %v724_v58 = vld [vmem:[%s693_s24] sm:$0x1]  ;;  %s718_s24 = scalar_lea.vmem %s3122_s17, %s2134_s29 }
 0x1bf   : > { %1335 = vbcast.lane.b32.xlu1 %v1333_v33, 256  ;;  %1328 = vbcast.lane.b32.xlu0 %v1326_v34, 256  ;;  %v1256_v26 = vsub.f32 0.0, %v724_v58 }
 0x1c0   : > { %2211 = vmatprep.subr.mxu0 %v2526_v0  ;;  %2222 = vmatprep.subr.mxu1 %v2526_v0 }
 0x1c1   : > { %v1261_v36 = vrot.slane %v1256_v26, %v2831_v43 }
 0x1c3   : > { %1342 = vbcast.lane.b32.xlu1 %v1340_v38, 256  ;;  %1314 = vbcast.lane.b32.xlu0 %v1312_v31, 256 }
 0x1c7   : > { %1349 = vbcast.lane.b32.xlu1 %v1347_v55, 256  ;;  %1321 = vbcast.lane.b32.xlu0 %v1319_v27, 256 }
 0x1ce   : > { %v1199_v50 = vpop.permute.xlu1 %1198  ;;  %v1192_v13 = vpop.permute.xlu0 %1191 }
 0x1cf   : > { %v1249_v39 = vsub.f32 %v1199_v50, %v2150_v24  ;;  %v1248_v41 = vsub.f32 %v1192_v13, %v2150_v24 }
 0x1d1   : > { %v1264_v40 = vmul.f32 %v1261_v36, %v1249_v39  ;;  %v1263_v44 = vmul.f32 %v1261_v36, %v1248_v41 }
 0x1d2   : > { %v1220_v12 = vpop.permute.xlu1 %1219  ;;  %v1206_v46 = vpop.permute.xlu0 %1205 }
 0x1d3   : > { %v1272_v45 = vmul.f32 %v1264_v40, %v1249_v39  ;;  %v1271_v47 = vmul.f32 %v1263_v44, %v1248_v41  ;;  %v1252_v48 = vsub.f32 %v1220_v12, %v2150_v24  ;;  %v1250_v59 = vsub.f32 %v1206_v46, %v2150_v24 }
 0x1d5   : > { %v1281_v53 = vmul.f32 1.442695, %v1272_v45  ;;  %v1279_v54 = vmul.f32 1.442695, %v1271_v47  ;;  %v1267_v56 = vmul.f32 %v1261_v36, %v1252_v48  ;;  %v1265_v1 = vmul.f32 %v1261_v36, %v1250_v59 }
 0x1d6   : > { %v1227_v19 = vpop.permute.xlu1 %1226  ;;  %v1213_v61 = vpop.permute.xlu0 %1212 }
 0x1d7   : > { %v1253_v51 = vsub.f32 %v1227_v19, %v2150_v24  ;;  %2330 = vpow2.f32 %v1281_v53  ;;  %v1275_v62 = vmul.f32 %v1267_v56, %v1252_v48  ;;  %v1251_v57 = vsub.f32 %v1213_v61, %v2150_v24 }
 0x1d8   : > { %2332 = vpow2.f32 %v1279_v54  ;;  %v1273_v6 = vmul.f32 %v1265_v1, %v1250_v59 }
 0x1d9   : > { %v1268_v60 = vmul.f32 %v1261_v36, %v1253_v51  ;;  %v1287_v63 = vmul.f32 1.442695, %v1275_v62  ;;  %v1266_v5 = vmul.f32 %v1261_v36, %v1251_v57 }
 0x1da   : > { %v1234_v49 = vpop.permute.xlu1 %1233  ;;  %v1168_v14 = vpop.permute.xlu0 %1167  ;;  %v1283_v16 = vmul.f32 1.442695, %v1273_v6 }
 0x1db   : > { %v1254_v23 = vsub.f32 %v1234_v49, %v2150_v24  ;;  %v1276_v2 = vmul.f32 %v1268_v60, %v1253_v51  ;;  %2334 = vpow2.f32 %v1287_v63  ;;  %v1274_v15 = vmul.f32 %v1266_v5, %v1251_v57 }
 0x1dc   : > { %vm1180_vm7 = vcmp.eq.s32.totalorder %v1168_v14, %v2147_v17 }
 0x1dd   : > { %v1269_v4 = vmul.f32 %v1261_v36, %v1254_v23  ;;  %v1289_v8 = vmul.f32 1.442695, %v1276_v2  ;;  %v1285_v20 = vmul.f32 1.442695, %v1274_v15  ;;  %v2148_v35 = vsel %vm1180_vm7, 1.0, %v2526_v0 }
 0x1de   : > { %v1241_v43 = vpop.permute.xlu1 %1240 }
 0x1df   : > { %v1255_v3 = vsub.f32 %v1241_v43, %v2150_v24  ;;  %v1277_v10 = vmul.f32 %v1269_v4, %v1254_v23  ;;  %2336 = vpow2.f32 %v1289_v8 }
 0x1e0   : > { %2338 = vpow2.f32 %v1283_v16 }
 0x1e1   : > { %v1270_v9 = vmul.f32 %v1261_v36, %v1255_v3  ;;  %v1291_v7 = vmul.f32 1.442695, %v1277_v10 }
 0x1e2   : > { %v1175_v11 = vpop.permute.xlu1 %1174 }
 0x1e3   : > { %v1278_v25 = vmul.f32 %v1270_v9, %v1255_v3  ;;  %2340 = vpow2.f32 %v1291_v7  ;;  %vm1181_vm13 = vcmp.eq.s32.totalorder %v1175_v11, %v2147_v17 }
 0x1e4   : > { %v2331_v18 = vpop.eup %2330  ;;  %2342 = vpow2.f32 %v1285_v20  ;;  %v2149_v13 = vsel %vm1181_vm13, 1.0, %v2526_v0 }
 0x1e5   : > { %v2333_v21 = vpop.eup %2332  ;;  %v1293_v22 = vmul.f32 1.442695, %v1278_v25 }
 0x1e7   : > { %2344 = vpow2.f32 %v1293_v22 }
 0x1e8   : > { %v2335_v27 = vpop.eup %2334 }
 0x1ec   : > { %v2337_v37 = vpop.eup %2336 }
 0x1ed   : > { %v2339_v41 = vpop.eup %2338 }
 0x1f0   : > { %v2341_v44 = vpop.eup %2340 }
 0x1f1   : > { %v2343_v56 = vpop.eup %2342 }
 0x1f4   : > { %v2345_v59 = vpop.eup %2344 }
 0x229   : > { %v1308_v52 = vpop.permute.xlu1 %1307  ;;  %v1301_v28 = vpop.permute.xlu0 %1300 }
 0x22a   : > { %v1352_v29 = vmul.f32 %v2331_v18, %v1308_v52  ;;  %v1351_v30 = vmul.f32 %v2333_v21, %v1301_v28 }
 0x22c   : > { %v1360_v32 = vmul.f32 %v2148_v35, %v1352_v29  ;;  %v1359_v33 = vmul.f32 %v2148_v35, %v1351_v30 }
 0x22e   : > { %v1375_v34 = vsel %vm1367_vm8, %v1360_v32, 0.0  ;;  %v1368_v38 = vsel %vm1367_vm8, %v1359_v33, 0.0 }
 0x22f   : > { %v1376_v31 = vrot.slane %v1375_v34, 4  ;;  %v1369_v55 = vrot.slane %v1368_v38, 4 }
 0x231   : > { %v1336_v42 = vpop.permute.xlu1 %1335  ;;  %v1329_v50 = vpop.permute.xlu0 %1328  ;;  %v1377_v58 = vadd.f32 %v1376_v31, %v1375_v34  ;;  %v1370_v26 = vadd.f32 %v1369_v55, %v1368_v38 }
 0x232   : > { %v1356_v24 = vmul.f32 %v2337_v37, %v1336_v42  ;;  %v1355_v12 = vmul.f32 %v2335_v27, %v1329_v50 }
 0x233   : > { %v1378_v45 = vrot.slane %v1377_v58, 2  ;;  %v1371_v46 = vrot.slane %v1370_v26, 2 }
 0x234   : > { %v1364_v36 = vmul.f32 %v2149_v13, %v1356_v24  ;;  %v1363_v39 = vmul.f32 %v2149_v13, %v1355_v12 }
 0x235   : > { %v1343_v19 = vpop.permute.xlu1 %1342  ;;  %v1315_v40 = vpop.permute.xlu0 %1314  ;;  %v1379_v1 = vadd.f32 %v1378_v45, %v1377_v58  ;;  %v1372_v2 = vadd.f32 %v1371_v46, %v1370_v26 }
 0x236   : > { %v1403_v47 = vsel %vm1367_vm8, %v1364_v36, 0.0  ;;  %v1396_v48 = vsel %vm1367_vm8, %v1363_v39, 0.0  ;;  %v1357_v53 = vmul.f32 %v2341_v44, %v1343_v19  ;;  %v1353_v54 = vmul.f32 %v2339_v41, %v1315_v40 }
 0x237   : > { %v1404_v49 = vrot.slane %v1403_v47, 4  ;;  %v1397_v51 = vrot.slane %v1396_v48, 4  ;;  %v1380_v22 = vrot.slane %v1379_v1, 1  ;;  %v1373_v52 = vrot.slane %v1372_v2, 1 }
 0x238   : > { %v1365_v23 = vmul.f32 %v2149_v13, %v1357_v53  ;;  %v1361_v43 = vmul.f32 %v2148_v35, %v1353_v54  ;;  %v1667_v53 = vld [vmem:[#allocation7 + $0x10] sm:$0xff]  ;;  %v1666_v54 = vld [vmem:[#allocation7 + $0x8] sm:$0xff] }
 0x239   : > { %v1405_v60 = vadd.f32 %v1404_v49, %v1403_v47  ;;  %v1398_v61 = vadd.f32 %v1397_v51, %v1396_v48  ;;  %v1350_v62 = vpop.permute.xlu1 %1349  ;;  %v1322_v57 = vpop.permute.xlu0 %1321  ;;  %v1381_v27 = vadd.f32 %v1380_v22, %v1379_v1  ;;  %v1374_v37 = vadd.f32 %v1373_v52, %v1372_v2  ;;  %v1668_v51 = vld [vmem:[#allocation7 + $0x18] sm:$0xff] }
 0x23a   : > { %v1358_v3 = vmul.f32 %v2345_v59, %v1350_v62  ;;  %v1354_v4 = vmul.f32 %v2343_v56, %v1322_v57  ;;  %v1410_v6 = vsel %vm1367_vm8, %v1365_v23, 0.0  ;;  %v1382_v8 = vsel %vm1367_vm8, %v1361_v43, 0.0  ;;  %v1665_v56 = vld [vmem:[#allocation7] sm:$0xff] }
 0x23b   : > { %v1406_v63 = vrot.slane %v1405_v60, 2  ;;  %v1399_v5 = vrot.slane %v1398_v61, 2  ;;  %v1411_v9 = vrot.slane %v1410_v6, 4  ;;  %v1383_v10 = vrot.slane %v1382_v8, 4  ;;  %v2151_v59 = vld [vmem:[%s702_s1] ss:$0 sm:$0xff] }
 0x23c   : > { %v1366_v11 = vmul.f32 %v2149_v13, %v1358_v3  ;;  %v1362_v14 = vmul.f32 %v2148_v35, %v1354_v4  ;;  %v1439_v44 = vsel %vm909_vm14, %v1381_v27, %v1374_v37 }
 0x23d   : > { %v1407_v15 = vadd.f32 %v1406_v63, %v1405_v60  ;;  %v1400_v16 = vadd.f32 %v1399_v5, %v1398_v61  ;;  %v1412_v25 = vadd.f32 %v1411_v9, %v1410_v6  ;;  %v1384_v17 = vadd.f32 %v1383_v10, %v1382_v8 }
 0x23e   : > { %v1417_v7 = vsel %vm1367_vm8, %v1366_v11, 0.0  ;;  %v1389_v18 = vsel %vm1367_vm8, %v1362_v14, 0.0 }
 0x23f   : > { %v1418_v20 = vrot.slane %v1417_v7, 4  ;;  %v1390_v21 = vrot.slane %v1389_v18, 4  ;;  %v1413_v28 = vrot.slane %v1412_v25, 2  ;;  %v1385_v29 = vrot.slane %v1384_v17, 2 }
 0x240   : > { %v1408_v30 = vrot.slane %v1407_v15, 1  ;;  %v1401_v32 = vrot.slane %v1400_v16, 1 }
 0x241   : > { %v1419_v33 = vadd.f32 %v1418_v20, %v1417_v7  ;;  %v1391_v34 = vadd.f32 %v1390_v21, %v1389_v18  ;;  %v1414_v38 = vadd.f32 %v1413_v28, %v1412_v25  ;;  %v1386_v35 = vadd.f32 %v1385_v29, %v1384_v17 }
 0x242   : > { %v1409_v58 = vadd.f32 %v1408_v30, %v1407_v15  ;;  %v1402_v26 = vadd.f32 %v1401_v32, %v1400_v16 }
 0x243   : > { %v1420_v31 = vrot.slane %v1419_v33, 2  ;;  %v1392_v55 = vrot.slane %v1391_v34, 2  ;;  %v1415_v42 = vrot.slane %v1414_v38, 1  ;;  %v1387_v50 = vrot.slane %v1386_v35, 1 }
 0x244   : > { %v1518_v45 = vsel %vm909_vm14, %v1409_v58, %v1402_v26 }
 0x245   : > { %v1421_v24 = vadd.f32 %v1420_v31, %v1419_v33  ;;  %v1393_v12 = vadd.f32 %v1392_v55, %v1391_v34  ;;  %v1416_v13 = vadd.f32 %v1415_v42, %v1414_v38  ;;  %v1388_v36 = vadd.f32 %v1387_v50, %v1386_v35 }
 0x247   : > { %v1422_v39 = vrot.slane %v1421_v24, 1  ;;  %v1394_v41 = vrot.slane %v1393_v12, 1  ;;  %v1440_v46 = vsel %vm910_vm15, %v1388_v36, %v1439_v44  ;;  %v1519_v47 = vsel %vm910_vm15, %v1416_v13, %v1518_v45  ;;  %v2154_v36 = vld [vmem:[%s705_s26] ss:$0 sm:$0xff]  ;;  %s714_s26 = scalar_lea.vmem %s3121_s23, %s3129_s0 }
 0x249   : > { %v1423_v19 = vadd.f32 %v1422_v39, %v1421_v24  ;;  %v1395_v40 = vadd.f32 %v1394_v41, %v1393_v12 }
 0x24b   : > { %v1441_v48 = vsel %vm912_vm1, %v1395_v40, %v1440_v46  ;;  %v1520_v49 = vsel %vm912_vm1, %v1423_v19, %v1519_v47  ;;  %v2155_v19 = vld [vmem:[%s708_s20] ss:$0 sm:$0xff] }
 0x24c   : > { %2202 = vmatmul.mubr.msk.f32.vlgmr.msra.gmra.mxu0 %vm1367_vm8, %v1441_v48  ;;  %2209 = vmatmul.mubr.msk.f32.vlgmr.msra.gmra.mxu1 %vm1367_vm8, %v1520_v49 }
 0x24d   : > { %2219 = vmatprep.mubr.msk.f32.mxu0 %vm2527_vm0, %v2526_v0  ;;  %2230 = vmatprep.mubr.msk.f32.mxu1 %vm2527_vm0, %v2526_v0  ;;  %vm1593_vm0 = vcmask 257024  }
 0x24e   : > { %2212 = vmatpush3.msra.mxu0 %v1668_v51  ;;  %2223 = vmatpush3.msra.mxu1 %v1668_v51 }
 0x24f   : > { %2213 = vmatprep.subr.mxu0 %v2526_v0  ;;  %2224 = vmatprep.subr.mxu1 %v2526_v0 }
 0x250   : > { %2214 = vmatpush3.msra.mxu0 %v1667_v53  ;;  %2225 = vmatpush3.msra.mxu1 %v1667_v53 }
 0x251   : > { %2215 = vmatprep.subr.mxu0 %v2526_v0  ;;  %2226 = vmatprep.subr.mxu1 %v2526_v0 }
 0x252   : > { %2216 = vmatpush3.msra.mxu0 %v1666_v54  ;;  %2227 = vmatpush3.msra.mxu1 %v1666_v54 }
 0x253   : > { %2217 = vmatprep.subr.mxu0 %v2526_v0  ;;  %2228 = vmatprep.subr.mxu1 %v2526_v0 }
 0x254   : > { %2218 = vmatpush3.msra.mxu0 %v1665_v56  ;;  %2229 = vmatpush3.msra.mxu1 %v1665_v56 }
 0x30c   : > { %v1510_v60 = vpop.f32.mrf.mxu0  ;;  %v1589_v61 = vpop.f32.mrf.mxu1 }
 0x30d   : > { %v1511_v23 = vadd.f32 %v2151_v59, %v1510_v60  ;;  %v1590_v43 = vadd.f32 %v2151_v59, %v1589_v61 }
 0x30e   : > { %v2203_v62 = vpop.f32.mrf.mxu0  ;;  %v2210_v57 = vpop.f32.mrf.mxu1 }
 0x30f   : > { %v1594_v1 = vsel %vm1593_vm0, %v1511_v23, 0.0  ;;  %v1601_v2 = vsel %vm1593_vm0, %v1590_v43, 0.0 }
 0x310   : > { %v1595_v3 = vrot.slane %v1594_v1, 4  ;;  %v1602_v0 = vrot.slane %v1601_v2, 4 }
 0x312   : > { %v1596_v4 = vadd.f32 %v1595_v3, %v1594_v1  ;;  %v1603_v63 = vadd.f32 %v1602_v0, %v1601_v2 }
 0x314   : > { %v1597_v5 = vrot.slane %v1596_v4, 2  ;;  %v1604_v6 = vrot.slane %v1603_v63, 2 }
 0x316   : > { %v1598_v8 = vadd.f32 %v1597_v5, %v1596_v4  ;;  %v1605_v9 = vadd.f32 %v1604_v6, %v1603_v63 }
 0x318   : > { %v1599_v10 = vrot.slane %v1598_v8, 1  ;;  %v1606_v11 = vrot.slane %v1605_v9, 1 }
 0x31a   : > { %v1600_v14 = vadd.f32 %v1599_v10, %v1598_v8  ;;  %v1607_v15 = vadd.f32 %v1606_v11, %v1605_v9 }
 0x31c   : > { %v1609_v16 = vsel %vm1608_vm2, %v1600_v14, 0.0  ;;  %v1610_v25 = vsel %vm1608_vm2, %v1607_v15, 0.0 }
 0x31d   : > { %v1611_v17 = vadd.f32 %v1610_v25, %v1609_v16 }
 0x31f   : > { %v1612_v7 = vmul.f32 0.125, %v1611_v17 }
 0x321   : > { %v1613_v18 = vsub.f32 %v1511_v23, %v1612_v7  ;;  %v1614_v20 = vsub.f32 %v1590_v43, %v1612_v7  ;;  %v2156_v23 = vld [vmem:[%s3078_s11] ss:$0 sm:$0xff] }
 0x323   : > { %v1615_v21 = vmul.f32 %v1613_v18, %v1613_v18  ;;  %v1616_v22 = vmul.f32 %v1614_v20, %v1614_v20 }
 0x325   : > { %v1617_v52 = vsel %vm1593_vm0, %v1615_v21, 0.0  ;;  %v1624_v28 = vsel %vm1593_vm0, %v1616_v22, 0.0 }
 0x326   : > { %v1618_v29 = vrot.slane %v1617_v52, 4  ;;  %v1625_v30 = vrot.slane %v1624_v28, 4 }
 0x328   : > { %v1619_v32 = vadd.f32 %v1618_v29, %v1617_v52  ;;  %v1626_v33 = vadd.f32 %v1625_v30, %v1624_v28 }
 0x32a   : > { %v1620_v34 = vrot.slane %v1619_v32, 2  ;;  %v1627_v38 = vrot.slane %v1626_v33, 2 }
 0x32c   : > { %v1621_v35 = vadd.f32 %v1620_v34, %v1619_v32  ;;  %v1628_v31 = vadd.f32 %v1627_v38, %v1626_v33 }
 0x32e   : > { %v1622_v55 = vrot.slane %v1621_v35, 1  ;;  %v1629_v27 = vrot.slane %v1628_v31, 1 }
 0x330   : > { %v1623_v37 = vadd.f32 %v1622_v55, %v1621_v35  ;;  %v1630_v42 = vadd.f32 %v1629_v27, %v1628_v31 }
 0x332   : > { %v1631_v50 = vsel %vm1608_vm2, %v1623_v37, 0.0  ;;  %v1632_v58 = vsel %vm1608_vm2, %v1630_v42, 0.0 }
 0x333   : > { %v1633_v26 = vadd.f32 %v1632_v58, %v1631_v50 }
 0x335   : > { %v1634_v24 = vmul.f32 0.125, %v1633_v26 }
 0x337   : > { %v1635_v12 = vadd.f32 1e-05, %v1634_v24 }
 0x339   : > { %2346 = vrsqrt.f32 %v1635_v12 }
 0x346   : > { %v2347_v13 = vpop.eup %2346 }
 0x347   : > { %v1637_v39 = vmul.f32 %v2347_v13, %v1613_v18  ;;  %v1638_v41 = vmul.f32 %v2347_v13, %v1614_v20 }
 0x349   : > { %v1645_v40 = vmul.f32 %v2154_v36, %v1637_v39  ;;  %v1646_v44 = vmul.f32 %v2154_v36, %v1638_v41 }
 0x34b   : > { %v1653_v45 = vadd.f32 %v2155_v19, %v1645_v40  ;;  %v1654_v46 = vadd.f32 %v2155_v19, %v1646_v44  ;;  %v2159_v19 = vld [vmem:[%s3079_s12] ss:$0 sm:$0xff] }
 0x34d   : > { %v1655_v47 = vsub.f32 0.0, %v1653_v45  ;;  %v1656_v48 = vsub.f32 0.0, %v1654_v46  ;;  %v2160_v45 = vld [vmem:[%s3080_s13] ss:$0 sm:$0xff] }
 0x34f   : > { %v1657_v49 = vmul.f32 1.442695, %v1655_v47  ;;  %v1659_v51 = vmul.f32 1.442695, %v1656_v48 }
 0x351   : > { %2348 = vpow2.f32 %v1657_v49 }
 0x352   : > { %2350 = vpow2.f32 %v1659_v51 }
 0x35e   : > { %v2349_v53 = vpop.eup %2348 }
 0x35f   : > { %v2351_v54 = vpop.eup %2350  ;;  %v1661_v56 = vadd.f32 1.0, %v2349_v53 }
 0x360   : > { %v1662_v59 = vadd.f32 1.0, %v2351_v54 }
 0x361   : > { %2352 = vrcp.f32 %v1661_v56 }
 0x362   : > { %2354 = vrcp.f32 %v1662_v59 }
 0x36e   : > { %v2353_v60 = vpop.eup %2352 }
 0x36f   : > { %v2355_v61 = vpop.eup %2354  ;;  %2220 = vmatmul.mubr.msk.f32.vlgmr.msra.gmra.mxu0 %vm1608_vm2, %v2353_v60 }
 0x370   : > { %2231 = vmatmul.mubr.msk.f32.vlgmr.msra.gmra.mxu1 %vm1608_vm2, %v2355_v61 }
 0x42f   : > { %v1747_v43 = vpop.f32.mrf.mxu0 }
 0x430   : > { %v1748_v62 = vadd.f32 %v2156_v23, %v1747_v43  ;;  %v1820_v57 = vpop.f32.mrf.mxu1  ;;  %v2161_v43 = vld [vmem:[%s711_s21] ss:$0 sm:$0xff] }
 0x431   : > { %v1821_v1 = vadd.f32 %v2156_v23, %v1820_v57  ;;  %v2221_v2 = vpop.f32.mrf.mxu0 }
 0x432   : > { %v1824_v3 = vsel %vm1593_vm0, %v1748_v62, 0.0  ;;  %v2232_v0 = vpop.f32.mrf.mxu1 }
 0x433   : > { %v1825_v4 = vrot.slane %v1824_v3, 4  ;;  %v1831_v63 = vsel %vm1593_vm0, %v1821_v1, 0.0 }
 0x434   : > { %v1832_v5 = vrot.slane %v1831_v63, 4 }
 0x435   : > { %v1826_v6 = vadd.f32 %v1825_v4, %v1824_v3  ;;  %v2162_v4 = vld [vmem:[%s714_s26] ss:$0 sm:$0xff] }
 0x436   : > { %v1833_v8 = vadd.f32 %v1832_v5, %v1831_v63 }
 0x437   : > { %v1827_v9 = vrot.slane %v1826_v6, 2 }
 0x438   : > { %v1834_v10 = vrot.slane %v1833_v8, 2 }
 0x439   : > { %v1828_v11 = vadd.f32 %v1827_v9, %v1826_v6 }
 0x43a   : > { %v1835_v14 = vadd.f32 %v1834_v10, %v1833_v8 }
 0x43b   : > { %v1829_v15 = vrot.slane %v1828_v11, 1 }
 0x43c   : > { %v1836_v16 = vrot.slane %v1835_v14, 1 }
 0x43d   : > { %v1830_v25 = vadd.f32 %v1829_v15, %v1828_v11 }
 0x43e   : > { %v1837_v17 = vadd.f32 %v1836_v16, %v1835_v14 }
 0x43f   : > { %v1838_v7 = vsel %vm1608_vm2, %v1830_v25, 0.0 }
 0x440   : > { %v1839_v18 = vsel %vm1608_vm2, %v1837_v17, 0.0 }
 0x441   : > { %v1840_v20 = vadd.f32 %v1839_v18, %v1838_v7 }
 0x443   : > { %v1841_v21 = vmul.f32 0.125, %v1840_v20 }
 0x445   : > { %v1842_v22 = vsub.f32 %v1748_v62, %v1841_v21  ;;  %v1843_v52 = vsub.f32 %v1821_v1, %v1841_v21 }
 0x447   : > { %v1844_v28 = vmul.f32 %v1842_v22, %v1842_v22  ;;  %v1845_v29 = vmul.f32 %v1843_v52, %v1843_v52 }
 0x449   : > { %v1846_v30 = vsel %vm1593_vm0, %v1844_v28, 0.0  ;;  %v1853_v32 = vsel %vm1593_vm0, %v1845_v29, 0.0 }
 0x44a   : > { %v1847_v33 = vrot.slane %v1846_v30, 4  ;;  %v1854_v34 = vrot.slane %v1853_v32, 4 }
 0x44c   : > { %v1848_v38 = vadd.f32 %v1847_v33, %v1846_v30  ;;  %v1855_v35 = vadd.f32 %v1854_v34, %v1853_v32 }
 0x44e   : > { %v1849_v31 = vrot.slane %v1848_v38, 2  ;;  %v1856_v55 = vrot.slane %v1855_v35, 2 }
 0x450   : > { %v1850_v27 = vadd.f32 %v1849_v31, %v1848_v38  ;;  %v1857_v37 = vadd.f32 %v1856_v55, %v1855_v35 }
 0x452   : > { %v1851_v42 = vrot.slane %v1850_v27, 1  ;;  %v1858_v50 = vrot.slane %v1857_v37, 1 }
 0x454   : > { %v1852_v58 = vadd.f32 %v1851_v42, %v1850_v27  ;;  %v1859_v26 = vadd.f32 %v1858_v50, %v1857_v37 }
 0x456   : > { %v1860_v24 = vsel %vm1608_vm2, %v1852_v58, 0.0  ;;  %v1861_v12 = vsel %vm1608_vm2, %v1859_v26, 0.0 }
 0x457   : > { %v1862_v13 = vadd.f32 %v1861_v12, %v1860_v24 }
 0x459   : > { %v1863_v36 = vmul.f32 0.125, %v1862_v13 }
 0x45b   : > { %v1864_v39 = vadd.f32 1e-05, %v1863_v36 }
 0x45d   : > { %2356 = vrsqrt.f32 %v1864_v39 }
 0x46a   : > { %v2357_v41 = vpop.eup %2356 }
 0x46b   : > { %v1866_v40 = vmul.f32 %v2357_v41, %v1842_v22  ;;  %v1867_v44 = vmul.f32 %v2357_v41, %v1843_v52 }
 0x46d   : > { %v1874_v46 = vmul.f32 %v2159_v19, %v1866_v40  ;;  %v1875_v47 = vmul.f32 %v2159_v19, %v1867_v44 }
 0x46f   : > { %v1882_v48 = vadd.f32 %v2160_v45, %v1874_v46  ;;  %v1883_v49 = vadd.f32 %v2160_v45, %v1875_v47 }
 0x471   : > { %v1884_v51 = vsub.f32 0.0, %v1882_v48  ;;  %v1885_v53 = vsub.f32 0.0, %v1883_v49 }
 0x473   : > { %v1886_v54 = vmul.f32 1.442695, %v1884_v51  ;;  %v1888_v56 = vmul.f32 1.442695, %v1885_v53 }
 0x475   : > { %2358 = vpow2.f32 %v1886_v54 }
 0x476   : > { %2360 = vpow2.f32 %v1888_v56 }
 0x482   : > { %v2359_v59 = vpop.eup %2358 }
 0x483   : > { %v2361_v60 = vpop.eup %2360  ;;  %v1890_v61 = vadd.f32 1.0, %v2359_v59 }
 0x484   : > { %v1891_v23 = vadd.f32 1.0, %v2361_v60 }
 0x485   : > { %2362 = vrcp.f32 %v1890_v61 }
 0x486   : > { %2364 = vrcp.f32 %v1891_v23 }
 0x492   : > { %v2363_v62 = vpop.eup %2362 }
 0x493   : > { %v2365_v57 = vpop.eup %2364  ;;  %v1902_v1 = vmul.f32 %v2363_v62, %v2161_v43 }
 0x494   : > { %v1903_v2 = vmul.f32 %v2365_v57, %v2161_v43 }
 0x495   : > { %v1904_v3 = vsel %vm1593_vm0, %v1902_v1, 0.0 }
 0x496   : > { %v1907_v0 = vsel %vm1593_vm0, %v1903_v2, 0.0  ;;  %1905 = vadd.xlane.f32.xlu0 %v1904_v3 }
 0x497   : > { %1908 = vadd.xlane.f32.xlu1 %v1907_v0 }
 0x51f   : > { %v1906_v63 = vpop.xlane.xlu0 %1905 }
 0x520   : > { %v1909_v5 = vpop.xlane.xlu1 %1908  ;;  %v1916_v6 = vadd.f32 %v2162_v4, %v1906_v63 }
 0x521   : > { %v1917_v8 = vadd.f32 %v2162_v4, %v1909_v5 }
 0x522   : > { %v1919_v9 = vsel %vm1918_vm3, %v1916_v6, 0.0 }
 0x523   : > { %v1926_v10 = vsel %vm1918_vm3, %v1917_v8, 0.0  ;;  %v1920_v11 = vrot.slane %v1919_v9, 4 }
 0x524   : > { %v1927_v14 = vrot.slane %v1926_v10, 4 }
 0x525   : > { %v1921_v15 = vadd.f32 %v1920_v11, %v1919_v9 }
 0x526   : > { %v1928_v16 = vadd.f32 %v1927_v14, %v1926_v10 }
 0x527   : > { %v1922_v25 = vrot.slane %v1921_v15, 2 }
 0x528   : > { %v1929_v17 = vrot.slane %v1928_v16, 2 }
 0x529   : > { %v1923_v7 = vadd.f32 %v1922_v25, %v1921_v15 }
 0x52a   : > { %v1930_v18 = vadd.f32 %v1929_v17, %v1928_v16 }
 0x52b   : > { %v1924_v20 = vrot.slane %v1923_v7, 1 }
 0x52c   : > { %v1931_v21 = vrot.slane %v1930_v18, 1 }
 0x52d   : > { %v1925_v22 = vadd.f32 %v1924_v20, %v1923_v7 }
 0x52e   : > { %v1932_v52 = vadd.f32 %v1931_v21, %v1930_v18 }
 0x530   : > { %v1935_v28 = vsel %vm909_vm14, %v1932_v52, %v1925_v22 }
 0x531   : > { %1938 = vst.msk [vmem:[%s718_s24] sm:$0x3] %vm1937_vm4, %v1935_v28 }
 0x532 PF: > { %s3123_s24 = sld [smem:[#allocation13_spill]]  ;;  %s3126_s21 = smov %s2508_s22 }
 0x533   : > { %s3124_s28 = sld [smem:[#allocation12_spill]] }
 0x534   : > { %s3125_s23 = sld [smem:[#allocation14_spill]] }
 0x538   : > { %p28_p8 = scmp.ge.s32.totalorder %s3123_s24, 4  }
 0x539   : > { %s3127_s22 = smov %s3124_s28 }
 0x53a   :  { %30 = sbr.rel (!%p28_p8) target bundleno = 11 (0xb), region = 168 }
 0x53f   :  { %1958 = vsyncpa [#allocation3], 1 }
 0x540   :  { %1960 = vsyncpa [#allocation3 + $0x1], 1 }
 0x541   :  { %1961 = vsyncpa [#allocation5], 1 }
 0x542   :  { %1963 = vsyncpa [#allocation5 + $0x1], 1 }
 0x543   :  { %1964 = vsyncpa [#allocation8], 1 }

</bundles_post_ra>
